<compile_context>
chip_gen: v6e
topology: v6e:2x2x1
jax: 0.10.0
libtpu: 0.0.40
codegen_flags: <defaults>
</compile_context>

<pallas_src>
import functools

import jax
import jax.numpy as jnp
from jax import lax
from jax.experimental import pallas as pl
from jax.experimental.pallas import tpu as pltpu

# ---------------- model dimensions (small, synthetic) ----------------
B = 2            # batch
C = 3            # input channels (RGB)
H = W = 16       # spatial
D = 32           # encoder feature dim
N_VERBS = 16     # verb vocabulary
N_ROLES = 6      # max roles per verb
N_NOUNS = 128    # noun vocabulary (lane-aligned)
TOPK = 5

# ---- packed small-parameter slab (rows x 128 lanes, f32) -> one DMA ----
#   rows [OFF_WV , OFF_WV +D)  cols [0,V) : wv   (D, V)  verb classifier weight
#   rows [OFF_EMB, OFF_EMB+V)  cols [0,D) : emb  (V, D)  verb embedding table
#   rows [OFF_WCB, OFF_WCB+D)  cols [0,C) : wc^T (D, C)  1x1-conv weight
#   rows [OFF_WCB, OFF_WCB+D)  col  C     : bc   (D,)    conv bias
#   row   OFF_BV               cols [0,V) : bv   (V,)    verb classifier bias
_OFF_WV = 0
_OFF_EMB = _OFF_WV + D
_OFF_WCB = _OFF_EMB + N_VERBS
_OFF_BV = _OFF_WCB + D
_SLAB_ROWS = ((_OFF_BV + 1 + 7) // 8) * 8
_SLAB_COLS = 128

# role slab: rows [0, D) = wr2d (D, R*N) with wr2d[d, r*N+n] == wr[r, d, n];
#            row  D      = br   (R*N,)   (bias folded in -> no extra DMA)
_WR_ROWS = ((D + 1 + 7) // 8) * 8


# ---------------- fused kernel: whole forward pass --------------------
def _joint_kernel(x_ref, slab_ref, wr_ref, verbs_ref, roles_ref, *, b, topk):
    # x:  (C, B*HW) f32      slab: (_SLAB_ROWS, 128) f32
    # wr: (_WR_ROWS, R*N) f32
    # verbs_ref: (B, topk) i32       roles_ref: (B*topk, R) i32
    f32 = jnp.float32
    c = x_ref.shape[0]
    hw = x_ref.shape[1] // b
    n_roles = roles_ref.shape[1]
    n_nouns = wr_ref.shape[1] // n_roles
    bt = b * topk

    # ---- synthetic encoder: 1x1 conv as C VPU broadcast-FMAs in lane-dense
    #      (D, B*HW) orientation, + bias, ReLU, per-image global average pool.
    x = x_ref[...]                                              # (C, B*HW)
    wcb = slab_ref[_OFF_WCB:_OFF_WCB + D, 0:c + 1]              # (D, C+1)
    hT = wcb[:, 0:1] * x[0:1, :]
    for ci in range(1, c):
        hT = hT + wcb[:, ci:ci + 1] * x[ci:ci + 1, :]
    hT = jnp.maximum(hT + wcb[:, c:c + 1], 0.0)                 # (D, B*HW)

    feat_rows = []
    for bi in range(b):
        seg = hT[:, bi * hw:(bi + 1) * hw]                      # lane-aligned
        feat_rows.append(jnp.mean(seg, axis=1)[None, :])        # (1, D)
    feat = jnp.concatenate(feat_rows, axis=0)                   # (B, D)

    # ---- verb classifier: one MXU matmul
    wv = slab_ref[_OFF_WV:_OFF_WV + D, 0:N_VERBS]               # (D, V)
    bv = slab_ref[_OFF_BV:_OFF_BV + 1, 0:N_VERBS]               # (1, V)
    verb_logits = jnp.dot(feat, wv, preferred_element_type=f32) + bv   # (B, V)

    # ---- descending top-k via ranks (pure 2-D VPU work on (B, V) tiles).
    #      rank[b, v] = #{w : l[w] > l[v]}  +  #{w : l[w] == l[v], w < v}
    #      == stable descending sort position (first-occurrence tie-break),
    #      identical to iterative argmax+mask.
    vidx = lax.broadcasted_iota(jnp.int32, (b, N_VERBS), 1)     # (B, V)
    rank = jnp.zeros((b, N_VERBS), jnp.int32)
    for wj in range(N_VERBS):
        lw = verb_logits[:, wj:wj + 1]                          # (B, 1)
        better = (lw > verb_logits) | ((lw == verb_logits) & (wj < vidx))
        rank = rank + better.astype(jnp.int32)

    verb_cols = []
    for k in range(topk):
        hit = rank == k                                         # (B, V)
        verb_cols.append(jnp.sum(jnp.where(hit, vidx, 0), axis=1)[:, None])
    verbs_ref[...] = jnp.concatenate(verb_cols, axis=1)         # (B, topk)

    # ---- batched one-hot of the B*topk selected verbs (rows b-major:
    #      row = b*topk + k) and matching broadcast of the image features.
    rowv = lax.broadcasted_iota(jnp.int32, (bt, N_VERBS), 0)
    onehot = jnp.zeros((bt, N_VERBS), f32)
    for bi in range(b):
        in_b = (rowv >= bi * topk) & (rowv < (bi + 1) * topk)
        k_of_row = rowv - bi * topk
        sel_b = in_b & (rank[bi:bi + 1, :] == k_of_row)
        onehot = jnp.where(sel_b, 1.0, onehot)                  # (B*topk, V)

    rowd = lax.broadcasted_iota(jnp.int32, (bt, D), 0)
    feat_bt = jnp.zeros((bt, D), f32)
    for bi in range(b):
        in_b = (rowd >= bi * topk) & (rowd < (bi + 1) * topk)
        feat_bt = jnp.where(in_b, feat[bi:bi + 1, :], feat_bt)  # (B*topk, D)

    # ---- ONE embedding matmul + ONE role matmul for all top-k verbs.
    #      Kept in f32: outputs are argmax indices, bf16 could flip near-ties.
    emb = slab_ref[_OFF_EMB:_OFF_EMB + N_VERBS, 0:D]            # (V, D)
    vemb = jnp.dot(onehot, emb, preferred_element_type=f32)     # (B*topk, D)
    z = feat_bt + vemb
    wr = wr_ref[0:D, :]                                         # (D, R*N)
    br = wr_ref[D:D + 1, :]                                     # (1, R*N)
    logits = jnp.dot(z, wr, preferred_element_type=f32) + br    # (B*topk, R*N)

    # ---- per-role noun argmax over lane-aligned 128-wide segments (6 reduces)
    role_cols = []
    for r in range(n_roles):
        seg = logits[:, r * n_nouns:(r + 1) * n_nouns]          # (B*topk, N)
        role_cols.append(jnp.argmax(seg, axis=-1).astype(jnp.int32)[:, None])
    roles_ref[...] = jnp.concatenate(role_cols, axis=1)         # (B*topk, R)


# ---------------- parameter init (deterministic, synthetic) ----------
def init_params(key):
    ks = jax.random.split(key, 4)
    s = 0.02
    wc = jax.random.normal(ks[0], (C, D), jnp.float32) * s
    bc = jnp.zeros((D,), jnp.float32)
    wv = jax.random.normal(ks[1], (D, N_VERBS), jnp.float32) * s
    bv = jnp.zeros((N_VERBS,), jnp.float32)
    emb = jax.random.normal(ks[2], (N_VERBS, D), jnp.float32) * s
    wr = jax.random.normal(ks[3], (N_ROLES, D, N_NOUNS), jnp.float32) * s
    br = jnp.zeros((N_ROLES, N_NOUNS), jnp.float32)

    # Pack the small params into one lane-aligned slab (single DMA at call time)
    slab = jnp.zeros((_SLAB_ROWS, _SLAB_COLS), jnp.float32)
    slab = slab.at[_OFF_WV:_OFF_WV + D, 0:N_VERBS].set(wv)
    slab = slab.at[_OFF_EMB:_OFF_EMB + N_VERBS, 0:D].set(emb)
    slab = slab.at[_OFF_WCB:_OFF_WCB + D, 0:C].set(wc.T)
    slab = slab.at[_OFF_WCB:_OFF_WCB + D, C].set(bc)
    slab = slab.at[_OFF_BV, 0:N_VERBS].set(bv)

    # Role weight stored lane-aligned as (D, R*N); bias folded in as row D:
    #   wr2d[d, r*N + n] == wr[r, d, n]
    wr2d = jnp.transpose(wr, (1, 0, 2)).reshape(D, N_ROLES * N_NOUNS)
    wr_slab = jnp.zeros((_WR_ROWS, N_ROLES * N_NOUNS), jnp.float32)
    wr_slab = wr_slab.at[0:D, :].set(wr2d)
    wr_slab = wr_slab.at[D, :].set(br.reshape(-1))
    return {'slab': slab, 'wr_slab': wr_slab}


# ---------------- forward (mirrors the PyTorch module) ---------------
@functools.partial(jax.jit, static_argnames=('topk',))
def forward(img_nchw, params, topk=TOPK):
    # TODO(synk): the real encoder is an arbitrary CNN passed to __init__
    # (e.g. ResNet) plus torchvision preprocessing; here it is a synthetic
    # 1x1-conv + ReLU + GAP stand-in.  The NCHW -> (C, B*HW) layout change is
    # one tiny XLA transpose so the kernel sees a lane-dense (minor dim 512)
    # input and a contiguous HBM->VMEM DMA.
    b, c, h, w = img_nchw.shape
    x = jnp.transpose(img_nchw, (1, 0, 2, 3)).reshape(c, b * h * w)

    kernel = functools.partial(_joint_kernel, b=b, topk=topk)
    verbs, role_idx = pl.pallas_call(
        kernel,
        out_shape=(jax.ShapeDtypeStruct((b, topk), jnp.int32),
                   jax.ShapeDtypeStruct((b * topk, N_ROLES), jnp.int32)),
        in_specs=[pl.BlockSpec(memory_space=pltpu.MemorySpace.VMEM)] * 3,
        out_specs=(pl.BlockSpec(memory_space=pltpu.MemorySpace.VMEM),
                   pl.BlockSpec(memory_space=pltpu.MemorySpace.VMEM)),
    )(x, params['slab'], params['wr_slab'])

    # Row b*topk + k of role_idx holds the R role predictions of image b for
    # its rank-k verb, so a plain reshape reproduces torch.cat(..., dim=1).
    role_pred_topk = role_idx.reshape(b, topk * N_ROLES)
    return verbs, role_pred_topk


if __name__ == "__main__":
    key = jax.random.PRNGKey(0)
    k_img, k_par = jax.random.split(key)
    img = jax.random.normal(k_img, (B, C, H, W), jnp.float32)   # NCHW like PyTorch
    params = init_params(k_par)

    verbs, role_pred_topk = forward(img, params, topk=TOPK)
    jax.block_until_ready((verbs, role_pred_topk))

    assert verbs.shape == (B, TOPK)
    assert verbs.dtype == jnp.int32
    assert role_pred_topk.shape == (B, TOPK * N_ROLES)
    assert role_pred_topk.dtype == jnp.int32
    print("KERNEL_OK")
</pallas_src>

<mosaic_0001>
module attributes {stable_mosaic.version = 11 : i64} {
  func.func @_joint_kernel(%arg0: memref<3x512xf32, #tpu.memory_space<vmem>>, %arg1: memref<88x128xf32, #tpu.memory_space<vmem>>, %arg2: memref<40x768xf32, #tpu.memory_space<vmem>>, %arg3: memref<2x5xi32, #tpu.memory_space<vmem>>, %arg4: memref<10x6xi32, #tpu.memory_space<vmem>>) attributes {dimension_semantics = [], scalar_prefetch = 0 : i64, scratch_operands = 0 : i64, tpu.core_type = #tpu.core_type<tc>} {
    %c0 = arith.constant 0 : index
    %c0_0 = arith.constant 0 : index
    %0 = vector.load %arg0[%c0, %c0_0] : memref<3x512xf32, #tpu.memory_space<vmem>>, vector<3x512xf32>
    %c48 = arith.constant 48 : index
    %c0_1 = arith.constant 0 : index
    %1 = vector.load %arg1[%c48, %c0_1] : memref<88x128xf32, #tpu.memory_space<vmem>>, vector<32x4xf32>
    %2 = vector.extract_strided_slice %1 {offsets = [0, 0], sizes = [32, 1], strides = [1, 1]} : vector<32x4xf32> to vector<32x1xf32>
    %3 = vector.extract_strided_slice %0 {offsets = [0, 0], sizes = [1, 512], strides = [1, 1]} : vector<3x512xf32> to vector<1x512xf32>
    %4 = vector.broadcast %2 : vector<32x1xf32> to vector<32x512xf32>
    %5 = vector.broadcast %3 : vector<1x512xf32> to vector<32x512xf32>
    %6 = arith.mulf %4, %5 : vector<32x512xf32>
    %7 = vector.extract_strided_slice %1 {offsets = [0, 1], sizes = [32, 1], strides = [1, 1]} : vector<32x4xf32> to vector<32x1xf32>
    %8 = vector.extract_strided_slice %0 {offsets = [1, 0], sizes = [1, 512], strides = [1, 1]} : vector<3x512xf32> to vector<1x512xf32>
    %9 = vector.broadcast %7 : vector<32x1xf32> to vector<32x512xf32>
    %10 = vector.broadcast %8 : vector<1x512xf32> to vector<32x512xf32>
    %11 = arith.mulf %9, %10 : vector<32x512xf32>
    %12 = arith.addf %6, %11 : vector<32x512xf32>
    %13 = vector.extract_strided_slice %1 {offsets = [0, 2], sizes = [32, 1], strides = [1, 1]} : vector<32x4xf32> to vector<32x1xf32>
    %14 = vector.extract_strided_slice %0 {offsets = [2, 0], sizes = [1, 512], strides = [1, 1]} : vector<3x512xf32> to vector<1x512xf32>
    %15 = vector.broadcast %13 : vector<32x1xf32> to vector<32x512xf32>
    %16 = vector.broadcast %14 : vector<1x512xf32> to vector<32x512xf32>
    %17 = arith.mulf %15, %16 : vector<32x512xf32>
    %18 = arith.addf %12, %17 : vector<32x512xf32>
    %19 = vector.extract_strided_slice %1 {offsets = [0, 3], sizes = [32, 1], strides = [1, 1]} : vector<32x4xf32> to vector<32x1xf32>
    %20 = vector.broadcast %19 : vector<32x1xf32> to vector<32x512xf32>
    %21 = arith.addf %18, %20 : vector<32x512xf32>
    %cst = arith.constant 0.000000e+00 : f32
    %22 = vector.broadcast %cst : f32 to vector<32x512xf32>
    %23 = arith.maximumf %21, %22 : vector<32x512xf32>
    %24 = vector.extract_strided_slice %23 {offsets = [0, 0], sizes = [32, 256], strides = [1, 1]} : vector<32x512xf32> to vector<32x256xf32>
    %cst_2 = arith.constant dense<0.000000e+00> : vector<32xf32>
    %25 = vector.multi_reduction <add>, %24, %cst_2 [1] : vector<32x256xf32> to vector<32xf32>
    %cst_3 = arith.constant 2.560000e+02 : f32
    %26 = vector.broadcast %cst_3 : f32 to vector<32xf32>
    %27 = arith.divf %25, %26 : vector<32xf32>
    %28 = vector.shape_cast %27 : vector<32xf32> to vector<1x32xf32>
    %29 = vector.extract_strided_slice %23 {offsets = [0, 256], sizes = [32, 256], strides = [1, 1]} : vector<32x512xf32> to vector<32x256xf32>
    %cst_4 = arith.constant dense<0.000000e+00> : vector<32xf32>
    %30 = vector.multi_reduction <add>, %29, %cst_4 [1] : vector<32x256xf32> to vector<32xf32>
    %cst_5 = arith.constant 2.560000e+02 : f32
    %31 = vector.broadcast %cst_5 : f32 to vector<32xf32>
    %32 = arith.divf %30, %31 : vector<32xf32>
    %33 = vector.shape_cast %32 : vector<32xf32> to vector<1x32xf32>
    %34 = tpu.concatenate %28, %33 in 0 : vector<1x32xf32>, vector<1x32xf32> -> vector<2x32xf32>
    %c0_6 = arith.constant 0 : index
    %c0_7 = arith.constant 0 : index
    %35 = vector.load %arg1[%c0_6, %c0_7] : memref<88x128xf32, #tpu.memory_space<vmem>>, vector<32x16xf32>
    %c80 = arith.constant 80 : index
    %c0_8 = arith.constant 0 : index
    %36 = vector.load %arg1[%c80, %c0_8] : memref<88x128xf32, #tpu.memory_space<vmem>>, vector<1x16xf32>
    %cst_9 = arith.constant dense<0.000000e+00> : vector<2x16xf32>
    %37 = tpu.matmul %34, %35, %cst_9 {dimension_numbers = #tpu.dot_dimension_numbers<[1], [0], [0], [1], [0, 0, 1, 1], [], []>} : vector<2x32xf32>, vector<32x16xf32>, vector<2x16xf32> -> vector<2x16xf32>
    %38 = vector.broadcast %36 : vector<1x16xf32> to vector<2x16xf32>
    %39 = arith.addf %37, %38 : vector<2x16xf32>
    %40 = tpu.iota {dimensions = array<i32: 1>} : vector<2x16xi32>
    %c0_i32 = arith.constant 0 : i32
    %41 = vector.broadcast %c0_i32 : i32 to vector<2x16xi32>
    %42 = vector.extract_strided_slice %39 {offsets = [0, 0], sizes = [2, 1], strides = [1, 1]} : vector<2x16xf32> to vector<2x1xf32>
    %43 = vector.broadcast %42 : vector<2x1xf32> to vector<2x16xf32>
    %44 = arith.cmpf ogt, %43, %39 : vector<2x16xf32>
    %45 = vector.broadcast %42 : vector<2x1xf32> to vector<2x16xf32>
    %46 = arith.cmpf oeq, %45, %39 : vector<2x16xf32>
    %c0_i32_10 = arith.constant 0 : i32
    %47 = vector.broadcast %c0_i32_10 : i32 to vector<2x16xi32>
    %48 = arith.cmpi sgt, %40, %47 : vector<2x16xi32>
    %49 = arith.andi %46, %48 : vector<2x16xi1>
    %50 = arith.ori %44, %49 : vector<2x16xi1>
    %51 = arith.extui %50 : vector<2x16xi1> to vector<2x16xi32>
    %52 = arith.addi %41, %51 : vector<2x16xi32>
    %53 = vector.extract_strided_slice %39 {offsets = [0, 1], sizes = [2, 1], strides = [1, 1]} : vector<2x16xf32> to vector<2x1xf32>
    %54 = vector.broadcast %53 : vector<2x1xf32> to vector<2x16xf32>
    %55 = arith.cmpf ogt, %54, %39 : vector<2x16xf32>
    %56 = vector.broadcast %53 : vector<2x1xf32> to vector<2x16xf32>
    %57 = arith.cmpf oeq, %56, %39 : vector<2x16xf32>
    %c1_i32 = arith.constant 1 : i32
    %58 = vector.broadcast %c1_i32 : i32 to vector<2x16xi32>
    %59 = arith.cmpi sgt, %40, %58 : vector<2x16xi32>
    %60 = arith.andi %57, %59 : vector<2x16xi1>
    %61 = arith.ori %55, %60 : vector<2x16xi1>
    %62 = arith.extui %61 : vector<2x16xi1> to vector<2x16xi32>
    %63 = arith.addi %52, %62 : vector<2x16xi32>
    %64 = vector.extract_strided_slice %39 {offsets = [0, 2], sizes = [2, 1], strides = [1, 1]} : vector<2x16xf32> to vector<2x1xf32>
    %65 = vector.broadcast %64 : vector<2x1xf32> to vector<2x16xf32>
    %66 = arith.cmpf ogt, %65, %39 : vector<2x16xf32>
    %67 = vector.broadcast %64 : vector<2x1xf32> to vector<2x16xf32>
    %68 = arith.cmpf oeq, %67, %39 : vector<2x16xf32>
    %c2_i32 = arith.constant 2 : i32
    %69 = vector.broadcast %c2_i32 : i32 to vector<2x16xi32>
    %70 = arith.cmpi sgt, %40, %69 : vector<2x16xi32>
    %71 = arith.andi %68, %70 : vector<2x16xi1>
    %72 = arith.ori %66, %71 : vector<2x16xi1>
    %73 = arith.extui %72 : vector<2x16xi1> to vector<2x16xi32>
    %74 = arith.addi %63, %73 : vector<2x16xi32>
    %75 = vector.extract_strided_slice %39 {offsets = [0, 3], sizes = [2, 1], strides = [1, 1]} : vector<2x16xf32> to vector<2x1xf32>
    %76 = vector.broadcast %75 : vector<2x1xf32> to vector<2x16xf32>
    %77 = arith.cmpf ogt, %76, %39 : vector<2x16xf32>
    %78 = vector.broadcast %75 : vector<2x1xf32> to vector<2x16xf32>
    %79 = arith.cmpf oeq, %78, %39 : vector<2x16xf32>
    %c3_i32 = arith.constant 3 : i32
    %80 = vector.broadcast %c3_i32 : i32 to vector<2x16xi32>
    %81 = arith.cmpi sgt, %40, %80 : vector<2x16xi32>
    %82 = arith.andi %79, %81 : vector<2x16xi1>
    %83 = arith.ori %77, %82 : vector<2x16xi1>
    %84 = arith.extui %83 : vector<2x16xi1> to vector<2x16xi32>
    %85 = arith.addi %74, %84 : vector<2x16xi32>
    %86 = vector.extract_strided_slice %39 {offsets = [0, 4], sizes = [2, 1], strides = [1, 1]} : vector<2x16xf32> to vector<2x1xf32>
    %87 = vector.broadcast %86 : vector<2x1xf32> to vector<2x16xf32>
    %88 = arith.cmpf ogt, %87, %39 : vector<2x16xf32>
    %89 = vector.broadcast %86 : vector<2x1xf32> to vector<2x16xf32>
    %90 = arith.cmpf oeq, %89, %39 : vector<2x16xf32>
    %c4_i32 = arith.constant 4 : i32
    %91 = vector.broadcast %c4_i32 : i32 to vector<2x16xi32>
    %92 = arith.cmpi sgt, %40, %91 : vector<2x16xi32>
    %93 = arith.andi %90, %92 : vector<2x16xi1>
    %94 = arith.ori %88, %93 : vector<2x16xi1>
    %95 = arith.extui %94 : vector<2x16xi1> to vector<2x16xi32>
    %96 = arith.addi %85, %95 : vector<2x16xi32>
    %97 = vector.extract_strided_slice %39 {offsets = [0, 5], sizes = [2, 1], strides = [1, 1]} : vector<2x16xf32> to vector<2x1xf32>
    %98 = vector.broadcast %97 : vector<2x1xf32> to vector<2x16xf32>
    %99 = arith.cmpf ogt, %98, %39 : vector<2x16xf32>
    %100 = vector.broadcast %97 : vector<2x1xf32> to vector<2x16xf32>
    %101 = arith.cmpf oeq, %100, %39 : vector<2x16xf32>
    %c5_i32 = arith.constant 5 : i32
    %102 = vector.broadcast %c5_i32 : i32 to vector<2x16xi32>
    %103 = arith.cmpi sgt, %40, %102 : vector<2x16xi32>
    %104 = arith.andi %101, %103 : vector<2x16xi1>
    %105 = arith.ori %99, %104 : vector<2x16xi1>
    %106 = arith.extui %105 : vector<2x16xi1> to vector<2x16xi32>
    %107 = arith.addi %96, %106 : vector<2x16xi32>
    %108 = vector.extract_strided_slice %39 {offsets = [0, 6], sizes = [2, 1], strides = [1, 1]} : vector<2x16xf32> to vector<2x1xf32>
    %109 = vector.broadcast %108 : vector<2x1xf32> to vector<2x16xf32>
    %110 = arith.cmpf ogt, %109, %39 : vector<2x16xf32>
    %111 = vector.broadcast %108 : vector<2x1xf32> to vector<2x16xf32>
    %112 = arith.cmpf oeq, %111, %39 : vector<2x16xf32>
    %c6_i32 = arith.constant 6 : i32
    %113 = vector.broadcast %c6_i32 : i32 to vector<2x16xi32>
    %114 = arith.cmpi sgt, %40, %113 : vector<2x16xi32>
    %115 = arith.andi %112, %114 : vector<2x16xi1>
    %116 = arith.ori %110, %115 : vector<2x16xi1>
    %117 = arith.extui %116 : vector<2x16xi1> to vector<2x16xi32>
    %118 = arith.addi %107, %117 : vector<2x16xi32>
    %119 = vector.extract_strided_slice %39 {offsets = [0, 7], sizes = [2, 1], strides = [1, 1]} : vector<2x16xf32> to vector<2x1xf32>
    %120 = vector.broadcast %119 : vector<2x1xf32> to vector<2x16xf32>
    %121 = arith.cmpf ogt, %120, %39 : vector<2x16xf32>
    %122 = vector.broadcast %119 : vector<2x1xf32> to vector<2x16xf32>
    %123 = arith.cmpf oeq, %122, %39 : vector<2x16xf32>
    %c7_i32 = arith.constant 7 : i32
    %124 = vector.broadcast %c7_i32 : i32 to vector<2x16xi32>
    %125 = arith.cmpi sgt, %40, %124 : vector<2x16xi32>
    %126 = arith.andi %123, %125 : vector<2x16xi1>
    %127 = arith.ori %121, %126 : vector<2x16xi1>
    %128 = arith.extui %127 : vector<2x16xi1> to vector<2x16xi32>
    %129 = arith.addi %118, %128 : vector<2x16xi32>
    %130 = vector.extract_strided_slice %39 {offsets = [0, 8], sizes = [2, 1], strides = [1, 1]} : vector<2x16xf32> to vector<2x1xf32>
    %131 = vector.broadcast %130 : vector<2x1xf32> to vector<2x16xf32>
    %132 = arith.cmpf ogt, %131, %39 : vector<2x16xf32>
    %133 = vector.broadcast %130 : vector<2x1xf32> to vector<2x16xf32>
    %134 = arith.cmpf oeq, %133, %39 : vector<2x16xf32>
    %c8_i32 = arith.constant 8 : i32
    %135 = vector.broadcast %c8_i32 : i32 to vector<2x16xi32>
    %136 = arith.cmpi sgt, %40, %135 : vector<2x16xi32>
    %137 = arith.andi %134, %136 : vector<2x16xi1>
    %138 = arith.ori %132, %137 : vector<2x16xi1>
    %139 = arith.extui %138 : vector<2x16xi1> to vector<2x16xi32>
    %140 = arith.addi %129, %139 : vector<2x16xi32>
    %141 = vector.extract_strided_slice %39 {offsets = [0, 9], sizes = [2, 1], strides = [1, 1]} : vector<2x16xf32> to vector<2x1xf32>
    %142 = vector.broadcast %141 : vector<2x1xf32> to vector<2x16xf32>
    %143 = arith.cmpf ogt, %142, %39 : vector<2x16xf32>
    %144 = vector.broadcast %141 : vector<2x1xf32> to vector<2x16xf32>
    %145 = arith.cmpf oeq, %144, %39 : vector<2x16xf32>
    %c9_i32 = arith.constant 9 : i32
    %146 = vector.broadcast %c9_i32 : i32 to vector<2x16xi32>
    %147 = arith.cmpi sgt, %40, %146 : vector<2x16xi32>
    %148 = arith.andi %145, %147 : vector<2x16xi1>
    %149 = arith.ori %143, %148 : vector<2x16xi1>
    %150 = arith.extui %149 : vector<2x16xi1> to vector<2x16xi32>
    %151 = arith.addi %140, %150 : vector<2x16xi32>
    %152 = vector.extract_strided_slice %39 {offsets = [0, 10], sizes = [2, 1], strides = [1, 1]} : vector<2x16xf32> to vector<2x1xf32>
    %153 = vector.broadcast %152 : vector<2x1xf32> to vector<2x16xf32>
    %154 = arith.cmpf ogt, %153, %39 : vector<2x16xf32>
    %155 = vector.broadcast %152 : vector<2x1xf32> to vector<2x16xf32>
    %156 = arith.cmpf oeq, %155, %39 : vector<2x16xf32>
    %c10_i32 = arith.constant 10 : i32
    %157 = vector.broadcast %c10_i32 : i32 to vector<2x16xi32>
    %158 = arith.cmpi sgt, %40, %157 : vector<2x16xi32>
    %159 = arith.andi %156, %158 : vector<2x16xi1>
    %160 = arith.ori %154, %159 : vector<2x16xi1>
    %161 = arith.extui %160 : vector<2x16xi1> to vector<2x16xi32>
    %162 = arith.addi %151, %161 : vector<2x16xi32>
    %163 = vector.extract_strided_slice %39 {offsets = [0, 11], sizes = [2, 1], strides = [1, 1]} : vector<2x16xf32> to vector<2x1xf32>
    %164 = vector.broadcast %163 : vector<2x1xf32> to vector<2x16xf32>
    %165 = arith.cmpf ogt, %164, %39 : vector<2x16xf32>
    %166 = vector.broadcast %163 : vector<2x1xf32> to vector<2x16xf32>
    %167 = arith.cmpf oeq, %166, %39 : vector<2x16xf32>
    %c11_i32 = arith.constant 11 : i32
    %168 = vector.broadcast %c11_i32 : i32 to vector<2x16xi32>
    %169 = arith.cmpi sgt, %40, %168 : vector<2x16xi32>
    %170 = arith.andi %167, %169 : vector<2x16xi1>
    %171 = arith.ori %165, %170 : vector<2x16xi1>
    %172 = arith.extui %171 : vector<2x16xi1> to vector<2x16xi32>
    %173 = arith.addi %162, %172 : vector<2x16xi32>
    %174 = vector.extract_strided_slice %39 {offsets = [0, 12], sizes = [2, 1], strides = [1, 1]} : vector<2x16xf32> to vector<2x1xf32>
    %175 = vector.broadcast %174 : vector<2x1xf32> to vector<2x16xf32>
    %176 = arith.cmpf ogt, %175, %39 : vector<2x16xf32>
    %177 = vector.broadcast %174 : vector<2x1xf32> to vector<2x16xf32>
    %178 = arith.cmpf oeq, %177, %39 : vector<2x16xf32>
    %c12_i32 = arith.constant 12 : i32
    %179 = vector.broadcast %c12_i32 : i32 to vector<2x16xi32>
    %180 = arith.cmpi sgt, %40, %179 : vector<2x16xi32>
    %181 = arith.andi %178, %180 : vector<2x16xi1>
    %182 = arith.ori %176, %181 : vector<2x16xi1>
    %183 = arith.extui %182 : vector<2x16xi1> to vector<2x16xi32>
    %184 = arith.addi %173, %183 : vector<2x16xi32>
    %185 = vector.extract_strided_slice %39 {offsets = [0, 13], sizes = [2, 1], strides = [1, 1]} : vector<2x16xf32> to vector<2x1xf32>
    %186 = vector.broadcast %185 : vector<2x1xf32> to vector<2x16xf32>
    %187 = arith.cmpf ogt, %186, %39 : vector<2x16xf32>
    %188 = vector.broadcast %185 : vector<2x1xf32> to vector<2x16xf32>
    %189 = arith.cmpf oeq, %188, %39 : vector<2x16xf32>
    %c13_i32 = arith.constant 13 : i32
    %190 = vector.broadcast %c13_i32 : i32 to vector<2x16xi32>
    %191 = arith.cmpi sgt, %40, %190 : vector<2x16xi32>
    %192 = arith.andi %189, %191 : vector<2x16xi1>
    %193 = arith.ori %187, %192 : vector<2x16xi1>
    %194 = arith.extui %193 : vector<2x16xi1> to vector<2x16xi32>
    %195 = arith.addi %184, %194 : vector<2x16xi32>
    %196 = vector.extract_strided_slice %39 {offsets = [0, 14], sizes = [2, 1], strides = [1, 1]} : vector<2x16xf32> to vector<2x1xf32>
    %197 = vector.broadcast %196 : vector<2x1xf32> to vector<2x16xf32>
    %198 = arith.cmpf ogt, %197, %39 : vector<2x16xf32>
    %199 = vector.broadcast %196 : vector<2x1xf32> to vector<2x16xf32>
    %200 = arith.cmpf oeq, %199, %39 : vector<2x16xf32>
    %c14_i32 = arith.constant 14 : i32
    %201 = vector.broadcast %c14_i32 : i32 to vector<2x16xi32>
    %202 = arith.cmpi sgt, %40, %201 : vector<2x16xi32>
    %203 = arith.andi %200, %202 : vector<2x16xi1>
    %204 = arith.ori %198, %203 : vector<2x16xi1>
    %205 = arith.extui %204 : vector<2x16xi1> to vector<2x16xi32>
    %206 = arith.addi %195, %205 : vector<2x16xi32>
    %207 = vector.extract_strided_slice %39 {offsets = [0, 15], sizes = [2, 1], strides = [1, 1]} : vector<2x16xf32> to vector<2x1xf32>
    %208 = vector.broadcast %207 : vector<2x1xf32> to vector<2x16xf32>
    %209 = arith.cmpf ogt, %208, %39 : vector<2x16xf32>
    %210 = vector.broadcast %207 : vector<2x1xf32> to vector<2x16xf32>
    %211 = arith.cmpf oeq, %210, %39 : vector<2x16xf32>
    %c15_i32 = arith.constant 15 : i32
    %212 = vector.broadcast %c15_i32 : i32 to vector<2x16xi32>
    %213 = arith.cmpi sgt, %40, %212 : vector<2x16xi32>
    %214 = arith.andi %211, %213 : vector<2x16xi1>
    %215 = arith.ori %209, %214 : vector<2x16xi1>
    %216 = arith.extui %215 : vector<2x16xi1> to vector<2x16xi32>
    %217 = arith.addi %206, %216 : vector<2x16xi32>
    %c0_i32_11 = arith.constant 0 : i32
    %218 = vector.broadcast %c0_i32_11 : i32 to vector<2x16xi32>
    %219 = arith.cmpi eq, %217, %218 : vector<2x16xi32>
    %c0_i32_12 = arith.constant 0 : i32
    %220 = vector.broadcast %c0_i32_12 : i32 to vector<2x16xi32>
    %221 = arith.select %219, %40, %220 : vector<2x16xi1>, vector<2x16xi32>
    %cst_13 = arith.constant dense<0> : vector<2xi32>
    %222 = vector.multi_reduction <add>, %221, %cst_13 [1] : vector<2x16xi32> to vector<2xi32>
    %223 = vector.shape_cast %222 : vector<2xi32> to vector<2x1xi32>
    %c1_i32_14 = arith.constant 1 : i32
    %224 = vector.broadcast %c1_i32_14 : i32 to vector<2x16xi32>
    %225 = arith.cmpi eq, %217, %224 : vector<2x16xi32>
    %c0_i32_15 = arith.constant 0 : i32
    %226 = vector.broadcast %c0_i32_15 : i32 to vector<2x16xi32>
    %227 = arith.select %225, %40, %226 : vector<2x16xi1>, vector<2x16xi32>
    %cst_16 = arith.constant dense<0> : vector<2xi32>
    %228 = vector.multi_reduction <add>, %227, %cst_16 [1] : vector<2x16xi32> to vector<2xi32>
    %229 = vector.shape_cast %228 : vector<2xi32> to vector<2x1xi32>
    %c2_i32_17 = arith.constant 2 : i32
    %230 = vector.broadcast %c2_i32_17 : i32 to vector<2x16xi32>
    %231 = arith.cmpi eq, %217, %230 : vector<2x16xi32>
    %c0_i32_18 = arith.constant 0 : i32
    %232 = vector.broadcast %c0_i32_18 : i32 to vector<2x16xi32>
    %233 = arith.select %231, %40, %232 : vector<2x16xi1>, vector<2x16xi32>
    %cst_19 = arith.constant dense<0> : vector<2xi32>
    %234 = vector.multi_reduction <add>, %233, %cst_19 [1] : vector<2x16xi32> to vector<2xi32>
    %235 = vector.shape_cast %234 : vector<2xi32> to vector<2x1xi32>
    %c3_i32_20 = arith.constant 3 : i32
    %236 = vector.broadcast %c3_i32_20 : i32 to vector<2x16xi32>
    %237 = arith.cmpi eq, %217, %236 : vector<2x16xi32>
    %c0_i32_21 = arith.constant 0 : i32
    %238 = vector.broadcast %c0_i32_21 : i32 to vector<2x16xi32>
    %239 = arith.select %237, %40, %238 : vector<2x16xi1>, vector<2x16xi32>
    %cst_22 = arith.constant dense<0> : vector<2xi32>
    %240 = vector.multi_reduction <add>, %239, %cst_22 [1] : vector<2x16xi32> to vector<2xi32>
    %241 = vector.shape_cast %240 : vector<2xi32> to vector<2x1xi32>
    %c4_i32_23 = arith.constant 4 : i32
    %242 = vector.broadcast %c4_i32_23 : i32 to vector<2x16xi32>
    %243 = arith.cmpi eq, %217, %242 : vector<2x16xi32>
    %c0_i32_24 = arith.constant 0 : i32
    %244 = vector.broadcast %c0_i32_24 : i32 to vector<2x16xi32>
    %245 = arith.select %243, %40, %244 : vector<2x16xi1>, vector<2x16xi32>
    %cst_25 = arith.constant dense<0> : vector<2xi32>
    %246 = vector.multi_reduction <add>, %245, %cst_25 [1] : vector<2x16xi32> to vector<2xi32>
    %247 = vector.shape_cast %246 : vector<2xi32> to vector<2x1xi32>
    %248 = tpu.concatenate %223, %229, %235, %241, %247 in 1 : vector<2x1xi32>, vector<2x1xi32>, vector<2x1xi32>, vector<2x1xi32>, vector<2x1xi32> -> vector<2x5xi32>
    %c0_26 = arith.constant 0 : index
    %c0_27 = arith.constant 0 : index
    %249 = vector.load %arg3[%c0_26, %c0_27] : memref<2x5xi32, #tpu.memory_space<vmem>>, vector<2x5xi32>
    tpu.vector_store %arg3[%c0_26, %c0_27], %248 {strides = array<i32>} : memref<2x5xi32, #tpu.memory_space<vmem>>, vector<2x5xi32>,
    %250 = tpu.iota {dimensions = array<i32: 0>} : vector<10x16xi32>
    %cst_28 = arith.constant 0.000000e+00 : f32
    %251 = vector.broadcast %cst_28 : f32 to vector<10x16xf32>
    %c0_i32_29 = arith.constant 0 : i32
    %252 = vector.broadcast %c0_i32_29 : i32 to vector<10x16xi32>
    %253 = arith.cmpi sge, %250, %252 : vector<10x16xi32>
    %c5_i32_30 = arith.constant 5 : i32
    %254 = vector.broadcast %c5_i32_30 : i32 to vector<10x16xi32>
    %255 = arith.cmpi slt, %250, %254 : vector<10x16xi32>
    %256 = arith.andi %253, %255 : vector<10x16xi1>
    %c0_i32_31 = arith.constant 0 : i32
    %257 = vector.broadcast %c0_i32_31 : i32 to vector<10x16xi32>
    %258 = arith.subi %250, %257 : vector<10x16xi32>
    %259 = vector.extract_strided_slice %217 {offsets = [0, 0], sizes = [1, 16], strides = [1, 1]} : vector<2x16xi32> to vector<1x16xi32>
    %260 = vector.broadcast %259 : vector<1x16xi32> to vector<10x16xi32>
    %261 = arith.cmpi eq, %260, %258 : vector<10x16xi32>
    %262 = arith.andi %256, %261 : vector<10x16xi1>
    %cst_32 = arith.constant 1.000000e+00 : f32
    %263 = vector.broadcast %cst_32 : f32 to vector<10x16xf32>
    %264 = arith.select %262, %263, %251 : vector<10x16xi1>, vector<10x16xf32>
    %c5_i32_33 = arith.constant 5 : i32
    %265 = vector.broadcast %c5_i32_33 : i32 to vector<10x16xi32>
    %266 = arith.cmpi sge, %250, %265 : vector<10x16xi32>
    %c10_i32_34 = arith.constant 10 : i32
    %267 = vector.broadcast %c10_i32_34 : i32 to vector<10x16xi32>
    %268 = arith.cmpi slt, %250, %267 : vector<10x16xi32>
    %269 = arith.andi %266, %268 : vector<10x16xi1>
    %c5_i32_35 = arith.constant 5 : i32
    %270 = vector.broadcast %c5_i32_35 : i32 to vector<10x16xi32>
    %271 = arith.subi %250, %270 : vector<10x16xi32>
    %272 = vector.extract_strided_slice %217 {offsets = [1, 0], sizes = [1, 16], strides = [1, 1]} : vector<2x16xi32> to vector<1x16xi32>
    %273 = vector.broadcast %272 : vector<1x16xi32> to vector<10x16xi32>
    %274 = arith.cmpi eq, %273, %271 : vector<10x16xi32>
    %275 = arith.andi %269, %274 : vector<10x16xi1>
    %cst_36 = arith.constant 1.000000e+00 : f32
    %276 = vector.broadcast %cst_36 : f32 to vector<10x16xf32>
    %277 = arith.select %275, %276, %264 : vector<10x16xi1>, vector<10x16xf32>
    %278 = tpu.iota {dimensions = array<i32: 0>} : vector<10x32xi32>
    %cst_37 = arith.constant 0.000000e+00 : f32
    %279 = vector.broadcast %cst_37 : f32 to vector<10x32xf32>
    %c0_i32_38 = arith.constant 0 : i32
    %280 = vector.broadcast %c0_i32_38 : i32 to vector<10x32xi32>
    %281 = arith.cmpi sge, %278, %280 : vector<10x32xi32>
    %c5_i32_39 = arith.constant 5 : i32
    %282 = vector.broadcast %c5_i32_39 : i32 to vector<10x32xi32>
    %283 = arith.cmpi slt, %278, %282 : vector<10x32xi32>
    %284 = arith.andi %281, %283 : vector<10x32xi1>
    %285 = vector.extract_strided_slice %34 {offsets = [0, 0], sizes = [1, 32], strides = [1, 1]} : vector<2x32xf32> to vector<1x32xf32>
    %286 = vector.shape_cast %285 : vector<1x32xf32> to vector<1x32xf32>
    %287 = vector.broadcast %286 : vector<1x32xf32> to vector<10x32xf32>
    %288 = arith.select %284, %287, %279 : vector<10x32xi1>, vector<10x32xf32>
    %c5_i32_40 = arith.constant 5 : i32
    %289 = vector.broadcast %c5_i32_40 : i32 to vector<10x32xi32>
    %290 = arith.cmpi sge, %278, %289 : vector<10x32xi32>
    %c10_i32_41 = arith.constant 10 : i32
    %291 = vector.broadcast %c10_i32_41 : i32 to vector<10x32xi32>
    %292 = arith.cmpi slt, %278, %291 : vector<10x32xi32>
    %293 = arith.andi %290, %292 : vector<10x32xi1>
    %294 = vector.extract_strided_slice %34 {offsets = [1, 0], sizes = [1, 32], strides = [1, 1]} : vector<2x32xf32> to vector<1x32xf32>
    %295 = vector.shape_cast %294 : vector<1x32xf32> to vector<1x32xf32>
    %296 = vector.broadcast %295 : vector<1x32xf32> to vector<10x32xf32>
    %297 = arith.select %293, %296, %288 : vector<10x32xi1>, vector<10x32xf32>
    %c32 = arith.constant 32 : index
    %c0_42 = arith.constant 0 : index
    %298 = vector.load %arg1[%c32, %c0_42] : memref<88x128xf32, #tpu.memory_space<vmem>>, vector<16x32xf32>
    %cst_43 = arith.constant dense<0.000000e+00> : vector<10x32xf32>
    %299 = tpu.matmul %277, %298, %cst_43 {dimension_numbers = #tpu.dot_dimension_numbers<[1], [0], [0], [1], [0, 0, 1, 1], [], []>} : vector<10x16xf32>, vector<16x32xf32>, vector<10x32xf32> -> vector<10x32xf32>
    %300 = arith.addf %297, %299 : vector<10x32xf32>
    %c0_44 = arith.constant 0 : index
    %c0_45 = arith.constant 0 : index
    %301 = vector.load %arg2[%c0_44, %c0_45] : memref<40x768xf32, #tpu.memory_space<vmem>>, vector<32x768xf32>
    %c32_46 = arith.constant 32 : index
    %c0_47 = arith.constant 0 : index
    %302 = vector.load %arg2[%c32_46, %c0_47] : memref<40x768xf32, #tpu.memory_space<vmem>>, vector<1x768xf32>
    %cst_48 = arith.constant dense<0.000000e+00> : vector<10x768xf32>
    %303 = tpu.matmul %300, %301, %cst_48 {dimension_numbers = #tpu.dot_dimension_numbers<[1], [0], [0], [1], [0, 0, 1, 1], [], []>} : vector<10x32xf32>, vector<32x768xf32>, vector<10x768xf32> -> vector<10x768xf32>
    %304 = vector.broadcast %302 : vector<1x768xf32> to vector<10x768xf32>
    %305 = arith.addf %303, %304 : vector<10x768xf32>
    %306 = vector.extract_strided_slice %305 {offsets = [0, 0], sizes = [10, 128], strides = [1, 1]} : vector<10x768xf32> to vector<10x128xf32>
    %307 = tpu.reduce_index %306 {axis = 1 : i32, kind = #tpu.reduction_kind<arg_max>} : vector<10x128xf32> -> vector<10xi32>
    %308 = vector.shape_cast %307 : vector<10xi32> to vector<10x1xi32>
    %309 = vector.extract_strided_slice %305 {offsets = [0, 128], sizes = [10, 128], strides = [1, 1]} : vector<10x768xf32> to vector<10x128xf32>
    %310 = tpu.reduce_index %309 {axis = 1 : i32, kind = #tpu.reduction_kind<arg_max>} : vector<10x128xf32> -> vector<10xi32>
    %311 = vector.shape_cast %310 : vector<10xi32> to vector<10x1xi32>
    %312 = vector.extract_strided_slice %305 {offsets = [0, 256], sizes = [10, 128], strides = [1, 1]} : vector<10x768xf32> to vector<10x128xf32>
    %313 = tpu.reduce_index %312 {axis = 1 : i32, kind = #tpu.reduction_kind<arg_max>} : vector<10x128xf32> -> vector<10xi32>
    %314 = vector.shape_cast %313 : vector<10xi32> to vector<10x1xi32>
    %315 = vector.extract_strided_slice %305 {offsets = [0, 384], sizes = [10, 128], strides = [1, 1]} : vector<10x768xf32> to vector<10x128xf32>
    %316 = tpu.reduce_index %315 {axis = 1 : i32, kind = #tpu.reduction_kind<arg_max>} : vector<10x128xf32> -> vector<10xi32>
    %317 = vector.shape_cast %316 : vector<10xi32> to vector<10x1xi32>
    %318 = vector.extract_strided_slice %305 {offsets = [0, 512], sizes = [10, 128], strides = [1, 1]} : vector<10x768xf32> to vector<10x128xf32>
    %319 = tpu.reduce_index %318 {axis = 1 : i32, kind = #tpu.reduction_kind<arg_max>} : vector<10x128xf32> -> vector<10xi32>
    %320 = vector.shape_cast %319 : vector<10xi32> to vector<10x1xi32>
    %321 = vector.extract_strided_slice %305 {offsets = [0, 640], sizes = [10, 128], strides = [1, 1]} : vector<10x768xf32> to vector<10x128xf32>
    %322 = tpu.reduce_index %321 {axis = 1 : i32, kind = #tpu.reduction_kind<arg_max>} : vector<10x128xf32> -> vector<10xi32>
    %323 = vector.shape_cast %322 : vector<10xi32> to vector<10x1xi32>
    %324 = tpu.concatenate %308, %311, %314, %317, %320, %323 in 1 : vector<10x1xi32>, vector<10x1xi32>, vector<10x1xi32>, vector<10x1xi32>, vector<10x1xi32>, vector<10x1xi32> -> vector<10x6xi32>
    %c0_49 = arith.constant 0 : index
    %c0_50 = arith.constant 0 : index
    %325 = vector.load %arg4[%c0_49, %c0_50] : memref<10x6xi32, #tpu.memory_space<vmem>>, vector<10x6xi32>
    tpu.vector_store %arg4[%c0_49, %c0_50], %324 {strides = array<i32>} : memref<10x6xi32, #tpu.memory_space<vmem>>, vector<10x6xi32>,
    return
  }
}

</mosaic_0001>

<bundles_post_ra>
// kernel: forward.1
= control target key start
LH: loop header
LB: loop body
LE: loop exit
PB: predicated region body
PF: predicated region fallthrough
CT: control target
= control target key end

     0   :  { %10 = vsyncpa [#allocation3], 0  ;;  %s1772_s0 = inlined_call_operand.vmem [shape: f32[3,512], index: 0, kind: input, shape index: {}]   ;;  %s1773_s1 = inlined_call_operand.hbm [shape: f32[88,128], index: 1, kind: input, shape index: {}]   ;;  %s1774_s2 = inlined_call_operand.vmem [shape: f32[40,768], index: 2, kind: input, shape index: {}]   ;;  %s1775_s3 = inlined_call_operand.hbm [shape: s32[2,5], index: 3, kind: output, shape index: {0}]   ;;  %s1776_s4 = inlined_call_operand.vmem [shape: s32[10,6], index: 4, kind: output, shape index: {1}]  }
   0x1   :  { %11 = vsyncpa [#allocation4], 0  ;;  %s1389_s15 = smov [#allocation2]  }
   0x2   :  { %s19_s16 = sshll.u32 %s1389_s15, 4  ;;  %s20_s16 = int_to_ptr.vmem [resolvable:$true] %s19_s16 }
   0x3   :  { %s1353_s17 = scalar_lea.vmem %s20_s16, 1408  ;;  %p1358_p1 = scmp.lt.s32.totalorder %s20_s16, %s20_s16 }
   0x4   :  { %p1354_p0 = scmp.ne.s32.totalorder %s20_s16, %s1353_s17  ;;  %p1359_p2 = scmp.lt.s32.totalorder %s1353_s17, %s1353_s17 }
   0x6   :  { %p1360_p3 = por %p1359_p2, %p1358_p1 }
   0x8   :  { %p1361_p4 = pnand %p1360_p3, %p1354_p0 }
   0xa   :  { %1364 = shalt.err (!%p1361_p4)
}
   0xb   :  { %s1390_s18 = smov 128   ;;  %s1391_s19 = smov 8  }
   0xc   :  { %25 = dma.hbm_to_vmem [thread:$0]  %s1773_s1, 1408, %s20_s16, [#allocation3], %s1390_s18, %s1390_s18, %s1391_s19  }
   0xd   :  { %1385 = dma.done.wait [#allocation3], 1408  }
   0xe   :  { %1386 = vsyncadd [#allocation3], 4294965888  ;;  %v1392_v0 = vmov 1   ;;  %v1393_v1 = vmov 0   ;;  %v33_v2 = vld [vmem:[#allocation2 + $0x30] sm:$0xff]  ;;  %v34_v3 = vld [vmem:[#allocation2 + $0x38] sm:$0xff]  ;;  %v59_v8 = vlaneseq }
   0xf   :  { %1323 = vset.pattern.permute.xlu1 %v1392_v0  ;;  %1322 = vset.pattern.permute.xlu0 %v1393_v1  ;;  %v35_v4 = vld [vmem:[#allocation2 + $0x40] sm:$0xff]  ;;  %v36_v5 = vld [vmem:[#allocation2 + $0x48] sm:$0xff]  ;;  %v1394_v6 = vmov 2   ;;  %v1395_v7 = vmov 3   ;;  %vm1397_vm0 = vmmov 0   ;;  %vm375_vm1 = vcmask 130112  }
  0x10   :  { %112 = vperm.xlu1 %1323, %v33_v2   ;;  %39 = vperm.xlu0 %1322, %v33_v2   ;;  %v1446_v9 = vshrl.u32 %v59_v8, 7  ;;  %v31_v12 = vld [vmem:[%s1772_s0] sm:$0x77]  ;;  %v32_v13 = vld [vmem:[%s1772_s0 + $0x8] sm:$0x77]  ;;  %vm382_vm2 = vcmask 195712  }
  0x11   :  { %vm389_vm3 = vcmask 261312   ;;  %vm416_vm4 = vcmask 1040384   ;;  %vm1777_vm5 = vcmask 261120  }
  0x12   :  { %v1449_v10 = vsub.s32 1, %v1446_v9  ;;  %v1452_v11 = vsub.s32 5, %v1446_v9  ;;  %v1461_v14 = vsub.s32 0, %v1446_v9  ;;  %v1464_v15 = vsub.s32 4, %v1446_v9 }
  0x13   :  { %v1475_v26 = vsub.s32 2, %v1446_v9  ;;  %v217_v27 = vsub.s32 6, %v1446_v9 }
  0x14   :  { %116 = vperm.xlu1 %1323, %v34_v3   ;;  %44 = vperm.xlu0 %1322, %v34_v3   ;;  %v130_v17 = vrot.slane %v31_v12, %v1449_v10  ;;  %v134_v18 = vrot.slane %v31_v12, %v1452_v11  ;;  %v138_v19 = vrot.slane %v32_v13, %v1449_v10 }
  0x15   :  { %v142_v20 = vrot.slane %v32_v13, %v1452_v11  ;;  %v62_v22 = vrot.slane %v31_v12, %v1461_v14  ;;  %v66_v23 = vrot.slane %v31_v12, %v1464_v15  ;;  %v70_v24 = vrot.slane %v32_v13, %v1461_v14 }
  0x16   :  { %v74_v25 = vrot.slane %v32_v13, %v1464_v15  ;;  %v150_v28 = vrot.slane %v130_v17, %v1449_v10  ;;  %v154_v29 = vrot.slane %v134_v18, %v1449_v10  ;;  %v158_v30 = vrot.slane %v138_v19, %v1449_v10 }
  0x17   :  { %v162_v31 = vrot.slane %v142_v20, %v1449_v10  ;;  %v82_v34 = vrot.slane %v62_v22, %v1461_v14  ;;  %v86_v35 = vrot.slane %v66_v23, %v1461_v14  ;;  %v90_v36 = vrot.slane %v70_v24, %v1461_v14 }
  0x18   :  { %120 = vperm.xlu1 %1323, %v35_v4   ;;  %49 = vperm.xlu0 %1322, %v35_v4   ;;  %v94_v37 = vrot.slane %v74_v25, %v1461_v14  ;;  %v214_v38 = vrot.slane %v31_v12, %v1475_v26  ;;  %v218_v39 = vrot.slane %v31_v12, %v217_v27 }
  0x19   :  { %v222_v40 = vrot.slane %v32_v13, %v1475_v26  ;;  %v226_v41 = vrot.slane %v32_v13, %v217_v27 }
  0x1a   :  { %v234_v62 = vrot.slane %v214_v38, %v1475_v26  ;;  %v238_v63 = vrot.slane %v218_v39, %v1475_v26 }
  0x1c   :  { %124 = vperm.xlu1 %1323, %v36_v5   ;;  %54 = vperm.xlu0 %1322, %v36_v5  }
  0x20   :  { %1325 = vset.pattern.permute.xlu1 %v1394_v6  ;;  %1324 = vset.pattern.permute.xlu0 %v1394_v6 }
  0x21   :  { %200 = vperm.xlu1 %1325, %v34_v3   ;;  %196 = vperm.xlu0 %1324, %v33_v2  }
  0x25   :  { %204 = vperm.xlu1 %1325, %v35_v4   ;;  %208 = vperm.xlu0 %1324, %v36_v5  }
  0x29   :  { %1326 = vset.pattern.permute.xlu1 %v1395_v7  ;;  %1327 = vset.pattern.permute.xlu0 %v1395_v7 }
  0x2a   :  { %280 = vperm.xlu1 %1326, %v33_v2   ;;  %284 = vperm.xlu0 %1327, %v34_v3   ;;  %v1491_v3 = vrot.slane %v222_v40, %v1475_v26 }
  0x2e   :  { %288 = vperm.xlu1 %1326, %v35_v4   ;;  %1329 = vset.pattern.permute.xlu0 %v1392_v0  ;;  %v1494_v4 = vrot.slane %v226_v41, %v1475_v26 }
  0x32   :  { %292 = vperm.xlu1 %1326, %v36_v5  }
  0x36   :  { %1328 = vset.pattern.permute.xlu1 %v1393_v1 }
  0x8b   :  { %v113_v16 = vpop.permute.xlu1 %112  ;;  %v40_v21 = vpop.permute.xlu0 %39 }
  0x8c   :  { %v163_v42 = vmul.f32 %v150_v28, %v113_v16  ;;  %v164_v43 = vmul.f32 %v154_v29, %v113_v16  ;;  %v165_v44 = vmul.f32 %v158_v30, %v113_v16  ;;  %v166_v45 = vmul.f32 %v162_v31, %v113_v16 }
  0x8d   :  { %v95_v48 = vmul.f32 %v82_v34, %v40_v21  ;;  %v96_v49 = vmul.f32 %v86_v35, %v40_v21  ;;  %v97_v50 = vmul.f32 %v90_v36, %v40_v21  ;;  %v98_v51 = vmul.f32 %v94_v37, %v40_v21 }
  0x8f   :  { %v117_v32 = vpop.permute.xlu1 %116  ;;  %v45_v33 = vpop.permute.xlu0 %44  ;;  %v179_v0 = vadd.f32 %v163_v42, %v95_v48  ;;  %v180_v2 = vadd.f32 %v164_v43, %v96_v49  ;;  %v181_v5 = vadd.f32 %v165_v44, %v97_v50  ;;  %v182_v12 = vadd.f32 %v166_v45, %v98_v51 }
  0x90   :  { %v167_v52 = vmul.f32 %v150_v28, %v117_v32  ;;  %v168_v53 = vmul.f32 %v154_v29, %v117_v32  ;;  %v99_v54 = vmul.f32 %v82_v34, %v45_v33  ;;  %v100_v55 = vmul.f32 %v86_v35, %v45_v33 }
  0x91   :  { %v169_v56 = vmul.f32 %v158_v30, %v117_v32  ;;  %v170_v57 = vmul.f32 %v162_v31, %v117_v32  ;;  %v101_v58 = vmul.f32 %v90_v36, %v45_v33  ;;  %v102_v59 = vmul.f32 %v94_v37, %v45_v33 }
  0x92   :  { %v183_v13 = vadd.f32 %v167_v52, %v99_v54  ;;  %v184_v16 = vadd.f32 %v168_v53, %v100_v55 }
  0x93   :  { %v121_v46 = vpop.permute.xlu1 %120  ;;  %v50_v47 = vpop.permute.xlu0 %49  ;;  %v185_v17 = vadd.f32 %v169_v56, %v101_v58  ;;  %v186_v18 = vadd.f32 %v170_v57, %v102_v59 }
  0x94   :  { %v171_v19 = vmul.f32 %v150_v28, %v121_v46  ;;  %v172_v20 = vmul.f32 %v154_v29, %v121_v46  ;;  %v173_v21 = vmul.f32 %v158_v30, %v121_v46  ;;  %v174_v22 = vmul.f32 %v162_v31, %v121_v46 }
  0x95   :  { %v103_v23 = vmul.f32 %v82_v34, %v50_v47  ;;  %v104_v24 = vmul.f32 %v86_v35, %v50_v47  ;;  %v105_v25 = vmul.f32 %v90_v36, %v50_v47  ;;  %v106_v27 = vmul.f32 %v94_v37, %v50_v47 }
  0x97   :  { %v125_v60 = vpop.permute.xlu1 %124  ;;  %v55_v61 = vpop.permute.xlu0 %54  ;;  %v187_v50 = vadd.f32 %v171_v19, %v103_v23  ;;  %v188_v51 = vadd.f32 %v172_v20, %v104_v24 }
  0x98   :  { %v175_v32 = vmul.f32 %v150_v28, %v125_v60  ;;  %v176_v33 = vmul.f32 %v154_v29, %v125_v60  ;;  %v177_v40 = vmul.f32 %v158_v30, %v125_v60  ;;  %v178_v41 = vmul.f32 %v162_v31, %v125_v60 }
  0x99   :  { %v107_v42 = vmul.f32 %v82_v34, %v55_v61  ;;  %v108_v43 = vmul.f32 %v86_v35, %v55_v61  ;;  %v109_v44 = vmul.f32 %v90_v36, %v55_v61  ;;  %v110_v45 = vmul.f32 %v94_v37, %v55_v61 }
  0x9a   :  { %v189_v34 = vadd.f32 %v173_v21, %v105_v25  ;;  %v190_v35 = vadd.f32 %v174_v22, %v106_v27 }
  0x9b   :  { %v191_v36 = vadd.f32 %v175_v32, %v107_v42  ;;  %v192_v37 = vadd.f32 %v176_v33, %v108_v43  ;;  %v193_v54 = vadd.f32 %v177_v40, %v109_v44  ;;  %v194_v55 = vadd.f32 %v178_v41, %v110_v45 }
  0x9c   :  { %v201_v38 = vpop.permute.xlu1 %200  ;;  %v197_v39 = vpop.permute.xlu0 %196 }
  0x9d   :  { %v251_v48 = vmul.f32 %v234_v62, %v201_v38  ;;  %v252_v49 = vmul.f32 %v238_v63, %v201_v38  ;;  %v253_v46 = vmul.f32 %v1491_v3, %v201_v38  ;;  %v254_v52 = vmul.f32 %v1494_v4, %v201_v38 }
  0x9e   :  { %v247_v53 = vmul.f32 %v234_v62, %v197_v39  ;;  %v248_v47 = vmul.f32 %v238_v63, %v197_v39  ;;  %v249_v28 = vmul.f32 %v1491_v3, %v197_v39  ;;  %v250_v29 = vmul.f32 %v1494_v4, %v197_v39 }
  0x9f   :  { %v267_v56 = vadd.f32 %v251_v48, %v183_v13  ;;  %v268_v57 = vadd.f32 %v252_v49, %v184_v16  ;;  %v269_v60 = vadd.f32 %v253_v46, %v185_v17  ;;  %v270_v61 = vadd.f32 %v254_v52, %v186_v18 }
  0xa0   :  { %v205_v30 = vpop.permute.xlu1 %204  ;;  %v209_v31 = vpop.permute.xlu0 %208  ;;  %v263_v19 = vadd.f32 %v247_v53, %v179_v0  ;;  %v264_v20 = vadd.f32 %v248_v47, %v180_v2  ;;  %v265_v23 = vadd.f32 %v249_v28, %v181_v5  ;;  %v266_v24 = vadd.f32 %v250_v29, %v182_v12 }
  0xa1   :  { %v255_v58 = vmul.f32 %v234_v62, %v205_v30  ;;  %v256_v59 = vmul.f32 %v238_v63, %v205_v30  ;;  %v257_v38 = vmul.f32 %v1491_v3, %v205_v30  ;;  %v258_v39 = vmul.f32 %v1494_v4, %v205_v30 }
  0xa2   :  { %v259_v21 = vmul.f32 %v234_v62, %v209_v31  ;;  %v260_v22 = vmul.f32 %v238_v63, %v209_v31  ;;  %v261_v52 = vmul.f32 %v1491_v3, %v209_v31 }
  0xa3   :  { %v271_v40 = vadd.f32 %v255_v58, %v187_v50  ;;  %v272_v41 = vadd.f32 %v256_v59, %v188_v51  ;;  %v262_v50 = vmul.f32 %v1494_v4, %v209_v31  ;;  %v273_v51 = vadd.f32 %v257_v38, %v189_v34 }
  0xa4   :  { %v274_v53 = vadd.f32 %v258_v39, %v190_v35  ;;  %v275_v29 = vadd.f32 %v259_v21, %v191_v36  ;;  %v276_v30 = vadd.f32 %v260_v22, %v192_v37  ;;  %v277_v31 = vadd.f32 %v261_v52, %v193_v54  ;;  %v420_v54 = vld [vmem:[#allocation2 + $0x10] sm:$0xff] }
  0xa5   :  { %v281_v25 = vpop.permute.xlu1 %280  ;;  %v285_v27 = vpop.permute.xlu0 %284  ;;  %v278_v34 = vadd.f32 %v262_v50, %v194_v55  ;;  %v419_v55 = vld [vmem:[#allocation2 + $0x8] sm:$0xff] }
  0xa6   :  { %v299_v32 = vadd.f32 %v285_v27, %v267_v56  ;;  %v300_v33 = vadd.f32 %v285_v27, %v268_v57  ;;  %v295_v13 = vadd.f32 %v281_v25, %v263_v19  ;;  %v296_v16 = vadd.f32 %v281_v25, %v264_v20 }
  0xa7   :  { %v297_v17 = vadd.f32 %v281_v25, %v265_v23  ;;  %v298_v18 = vadd.f32 %v281_v25, %v266_v24  ;;  %v301_v45 = vadd.f32 %v285_v27, %v269_v60  ;;  %v302_v62 = vadd.f32 %v285_v27, %v270_v61 }
  0xa8   :  { %v315_v0 = vmax.f32 %v299_v32, 0.0  ;;  %v316_v2 = vmax.f32 %v300_v33, 0.0  ;;  %v311_v5 = vmax.f32 %v295_v13, 0.0  ;;  %v312_v12 = vmax.f32 %v296_v16, 0.0  ;;  %v421_v33 = vld [vmem:[#allocation2 + $0x18] sm:$0xff]  ;;  %v418_v13 = vld [vmem:[#allocation2] sm:$0xff] }
  0xa9   :  { %v289_v42 = vpop.permute.xlu1 %288  ;;  %v313_v43 = vmax.f32 %v297_v17, 0.0  ;;  %v314_v44 = vmax.f32 %v298_v18, 0.0  ;;  %v317_v58 = vmax.f32 %v301_v45, 0.0  ;;  %v318_v59 = vmax.f32 %v302_v62, 0.0 }
  0xaa   :  { %v330_v63 = vadd.f32 %v316_v2, %v315_v0  ;;  %v327_v48 = vadd.f32 %v312_v12, %v311_v5  ;;  %v303_v49 = vadd.f32 %v289_v42, %v271_v40  ;;  %v304_v46 = vadd.f32 %v289_v42, %v272_v41 }
  0xab   :  { %v344_v57 = vadd.f32 %v314_v44, %v313_v43  ;;  %v305_v60 = vadd.f32 %v289_v42, %v273_v51  ;;  %v306_v23 = vadd.f32 %v289_v42, %v274_v53  ;;  %v347_v35 = vadd.f32 %v318_v59, %v317_v58 }
  0xac   :  { %331 = vadd.xlane.f32.xlu1 %v330_v63  ;;  %328 = vadd.xlane.f32.xlu0 %v327_v48  ;;  %v319_v47 = vmax.f32 %v303_v49, 0.0  ;;  %v320_v28 = vmax.f32 %v304_v46, 0.0  ;;  %v1396_v32 = vmov 0.0   ;;  %v1510_v41 = vand.u32 127, %v59_v8 }
  0xad   :  { %v293_v56 = vpop.permute.xlu1 %292  ;;  %v321_v24 = vmax.f32 %v305_v60, 0.0  ;;  %v322_v36 = vmax.f32 %v306_v23, 0.0  ;;  %1282 = vmatprep.subr.mxu0 %v1396_v32  ;;  %1290 = vmatprep.mubr.msk.f32.mxu0 %vm1397_vm0, %v1396_v32 }
  0xae   :  { %v333_v61 = vadd.f32 %v320_v28, %v319_v47  ;;  %v307_v19 = vadd.f32 %v293_v56, %v275_v29  ;;  %v308_v20 = vadd.f32 %v293_v56, %v276_v30  ;;  %v309_v37 = vadd.f32 %v293_v56, %v277_v31  ;;  %1283 = vmatpush3.msra.mxu0 %v421_v33 }
  0xaf   :  { %v310_v39 = vadd.f32 %v293_v56, %v278_v34  ;;  %v350_v21 = vadd.f32 %v322_v36, %v321_v24  ;;  %1284 = vmatprep.subr.mxu0 %v1396_v32  ;;  %v370_v0 = vadd.s32 4294967288, %v1510_v41  ;;  %v377_v2 = vadd.s32 4294967280, %v1510_v41  ;;  %v1259_v34 = vld [vmem:[#allocation2 + $0x50] ss:$0 sm:$0xff] }
  0xb0   :  { %334 = vadd.xlane.f32.xlu1 %v333_v61  ;;  %345 = vadd.xlane.f32.xlu0 %v344_v57  ;;  %v323_v3 = vmax.f32 %v307_v19, 0.0  ;;  %v324_v4 = vmax.f32 %v308_v20, 0.0  ;;  %v325_v22 = vmax.f32 %v309_v37, 0.0  ;;  %v384_v12 = vadd.s32 4294967272, %v1510_v41 }
  0xb1   :  { %v326_v25 = vmax.f32 %v310_v39, 0.0  ;;  %1285 = vmatpush3.msra.mxu0 %v420_v54  ;;  %v373_v42 = vsub.s32 %v370_v0, %v1446_v9  ;;  %v368_v45 = vsub.s32 %v1510_v41, %v1446_v9  ;;  %v380_v8 = vsub.s32 %v377_v2, %v1446_v9 }
  0xb2   :  { %v336_v38 = vadd.f32 %v324_v4, %v323_v3  ;;  %1286 = vmatprep.subr.mxu0 %v1396_v32  ;;  %v387_v52 = vsub.s32 %v384_v12, %v1446_v9  ;;  %v1398_v36 = vmov 10   ;;  %v1399_v37 = vmov 13  }
  0xb3   :  { %v353_v27 = vadd.f32 %v326_v25, %v325_v22  ;;  %1287 = vmatpush3.msra.mxu0 %v419_v55  ;;  %v1400_v39 = vmov 4   ;;  %v1402_v22 = vmov 5   ;;  %v1404_v25 = vmov 7  }
  0xb4   :  { %337 = vadd.xlane.f32.xlu1 %v336_v38  ;;  %348 = vadd.xlane.f32.xlu0 %v347_v35  ;;  %v1407_v33 = vmov 11   ;;  %v1408_v54 = vmov 12   ;;  %v1409_v55 = vmov 14   ;;  %vm518_vm6 = vcmp.gt.s32.totalorder %v1510_v41, 1 }
  0xb5   :  { %1288 = vmatprep.subr.mxu0 %v1396_v32  ;;  %vm508_vm8 = vcmp.gt.s32.totalorder %v1510_v41, 0  ;;  %vm529_vm12 = vcmp.gt.s32.totalorder %v1510_v41, 2 }
  0xb6   :  { %1289 = vmatpush3.msra.mxu0 %v418_v13  ;;  %v813_v13 = vld [vmem:[#allocation2 + $0x28] sm:$0xff] }
  0xb7   :  { %1293 = vmatprep.subr.mxu1 %v813_v13 }
  0xb8   :  { %351 = vadd.xlane.f32.xlu0 %v350_v21  ;;  %v1401_v21 = vmov 15   ;;  %1294 = vmatpush3.msra.mxu1 %v813_v13 }
  0xbc   :  { %354 = vadd.xlane.f32.xlu0 %v353_v27  ;;  %v1406_v27 = vmov 9  }
 0x135   :  { %v332_v16 = vpop.xlane.xlu1 %331  ;;  %v329_v40 = vpop.xlane.xlu0 %328 }
 0x136   :  { %v341_v44 = vmul.f32 0.00390625, %v332_v16  ;;  %v340_v62 = vmul.f32 0.00390625, %v329_v40  ;;  %v812_v16 = vld [vmem:[#allocation2 + $0x20] sm:$0xff] }
 0x137   :  { %1295 = vmatprep.subr.mxu1 %v812_v16 }
 0x138   :  { %v374_v53 = vrot.slane %v341_v44, %v373_v42  ;;  %v369_v47 = vrot.slane %v340_v62, %v368_v45  ;;  %1296 = vmatpush3.msra.mxu1 %v812_v16 }
 0x139   :  { %v335_v17 = vpop.xlane.xlu1 %334  ;;  %v346_v18 = vpop.xlane.xlu0 %345 }
 0x13a   :  { %v342_v48 = vmul.f32 0.00390625, %v335_v17  ;;  %v356_v46 = vmul.f32 0.00390625, %v346_v18  ;;  %v376_v60 = vsel %vm375_vm1, %v374_v53, %v369_v47 }
 0x13c   :  { %v381_v29 = vrot.slane %v342_v48, %v380_v8  ;;  %v399_v57 = vrot.slane %v356_v46, %v368_v45 }
 0x13d   :  { %v349_v5 = vpop.xlane.xlu0 %348  ;;  %v338_v43 = vpop.xlane.xlu1 %337 }
 0x13e   :  { %v357_v63 = vmul.f32 0.00390625, %v349_v5  ;;  %v343_v50 = vmul.f32 0.00390625, %v338_v43  ;;  %v383_v20 = vsel %vm382_vm2, %v381_v29, %v376_v60 }
 0x140   :  { %v403_v28 = vrot.slane %v357_v63, %v373_v42  ;;  %v388_v58 = vrot.slane %v343_v50, %v387_v52 }
 0x141   :  { %v352_v49 = vpop.xlane.xlu0 %351 }
 0x142   :  { %v358_v51 = vmul.f32 0.00390625, %v352_v49  ;;  %v404_v61 = vsel %vm375_vm1, %v403_v28, %v399_v57  ;;  %v390_v3 = vsel %vm389_vm3, %v388_v58, %v383_v20  ;;  %vm540_vm1 = vcmp.gt.s32.totalorder %v1510_v41, 3 }
 0x144   :  { %v408_v30 = vrot.slane %v358_v51, %v380_v8 }
 0x145   :  { %v355_v56 = vpop.xlane.xlu0 %354 }
 0x146   :  { %v359_v59 = vmul.f32 0.00390625, %v355_v56  ;;  %v409_v23 = vsel %vm382_vm2, %v408_v30, %v404_v61 }
 0x148   :  { %v413_v19 = vrot.slane %v359_v59, %v387_v52 }
 0x14a   :  { %v414_v4 = vsel %vm389_vm3, %v413_v19, %v409_v23 }
 0x14b   :  { %v1520_v31 = vsel %vm416_vm4, %v390_v3, %v414_v4 }
 0x14c   :  { %1291 = vmatmul.mubr.msk.f32.vlgmr.msra.gmra.mxu0 %vm1777_vm5, %v1520_v31 }
 0x14d   :  { %1104 = vmatprep.mubr.f32.mxu0 %v1396_v32 }
 0x20c   :  { %v497_v35 = vpop.f32.mrf.mxu0 }
 0x20d   :  { %v1525_v24 = vadd.f32 %v1259_v34, %v497_v35 }
 0x20e   :  { %v1292_v38 = vpop.f32.mrf.mxu0 }
 0x20f   :  { %513 = vperm.xlu0 %1329, %v1525_v24   ;;  %503 = vperm.xlu1 %1328, %v1525_v24  }
 0x213   :  { %1338 = vset.pattern.permute.xlu0 %v1398_v36  ;;  %1330 = vset.pattern.permute.xlu1 %v1394_v6  ;;  %v1403_v6 = vmov 6  }
 0x214   :  { %612 = vperm.xlu0 %1338, %v1525_v24   ;;  %524 = vperm.xlu1 %1330, %v1525_v24  }
 0x218   :  { %1341 = vset.pattern.permute.xlu0 %v1399_v37  ;;  %1331 = vset.pattern.permute.xlu1 %v1395_v7  ;;  %v1405_v7 = vmov 8  }
 0x219   :  { %645 = vperm.xlu0 %1341, %v1525_v24   ;;  %535 = vperm.xlu1 %1331, %v1525_v24  }
 0x21d   :  { %1332 = vset.pattern.permute.xlu1 %v1400_v39  ;;  %1344 = vset.pattern.permute.xlu0 %v1401_v21 }
 0x21e   :  { %546 = vperm.xlu1 %1332, %v1525_v24  }
 0x222   :  { %1333 = vset.pattern.permute.xlu1 %v1402_v22 }
 0x223   :  { %557 = vperm.xlu1 %1333, %v1525_v24  }
 0x227   :  { %1334 = vset.pattern.permute.xlu1 %v1403_v6  ;;  %v1609_v6 = vadd.s32 8, %v1446_v9 }
 0x228   :  { %568 = vperm.xlu1 %1334, %v1525_v24  }
 0x22c   :  { %1335 = vset.pattern.permute.xlu1 %v1404_v25 }
 0x22d   :  { %579 = vperm.xlu1 %1335, %v1525_v24  }
 0x231   :  { %1336 = vset.pattern.permute.xlu1 %v1405_v7 }
 0x232   :  { %590 = vperm.xlu1 %1336, %v1525_v24  }
 0x236   :  { %1337 = vset.pattern.permute.xlu1 %v1406_v27 }
 0x237   :  { %601 = vperm.xlu1 %1337, %v1525_v24  }
 0x23b   :  { %1339 = vset.pattern.permute.xlu1 %v1407_v33  ;;  %v1261_v33 = vadd.s32 4294967291, %v1446_v9 }
 0x23c   :  { %623 = vperm.xlu1 %1339, %v1525_v24  }
 0x240   :  { %1340 = vset.pattern.permute.xlu1 %v1408_v54  ;;  %v1262_v54 = vadd.s32 4294967291, %v1609_v6 }
 0x241   :  { %634 = vperm.xlu1 %1340, %v1525_v24  }
 0x245   :  { %1342 = vset.pattern.permute.xlu1 %v1409_v55 }
 0x246   :  { %656 = vperm.xlu1 %1342, %v1525_v24  }
 0x24a   :  { %1343 = vset.pattern.permute.xlu1 %v1401_v21 }
 0x24b   :  { %667 = vperm.xlu1 %1343, %v1525_v24  }
 0x28a   :  { %v504_v40 = vpop.permute.xlu1 %503  ;;  %v514_v0 = vpop.permute.xlu0 %513 }
 0x28b   :  { %vm517_vm7 = vcmp.eq.f32.partialorder %v514_v0, %v1525_v24  ;;  %vm507_vm9 = vcmp.eq.f32.partialorder %v504_v40, %v1525_v24  ;;  %vm516_vm10 = vcmp.gt.f32.partialorder %v514_v0, %v1525_v24  ;;  %vm506_vm14 = vcmp.gt.f32.partialorder %v504_v40, %v1525_v24 }
 0x28c   :  { %vm519_vm11 = vmand %vm517_vm7, %vm518_vm6  ;;  %vm551_vm6 = vcmp.gt.s32.totalorder %v1510_v41, 4 }
 0x28d   :  { %vm509_vm15 = vmand %vm507_vm9, %vm508_vm8 }
 0x28e   :  { %vm520_vm0 = vmor %vm516_vm10, %vm519_vm11  ;;  %vm562_vm11 = vcmp.gt.s32.totalorder %v1510_v41, 5 }
 0x28f   :  { %v525_v17 = vpop.permute.xlu1 %524  ;;  %vm510_vm5 = vmor %vm506_vm14, %vm509_vm15  ;;  %v521_v42 = vsel %vm520_vm0, 1, %v1393_v1  ;;  %v613_v52 = vpop.permute.xlu0 %612 }
 0x290   :  { %vm528_vm13 = vcmp.eq.f32.partialorder %v525_v17, %v1525_v24  ;;  %vm527_vm3 = vcmp.gt.f32.partialorder %v525_v17, %v1525_v24  ;;  %v511_v43 = vsel %vm510_vm5, 1, %v1393_v1  ;;  %vm584_vm5 = vcmp.gt.s32.totalorder %v1510_v41, 7 }
 0x291   :  { %vm530_vm4 = vmand %vm528_vm13, %vm529_vm12  ;;  %v522_v45 = vadd.s32 %v521_v42, %v511_v43 }
 0x292   :  { %vm531_vm10 = vmor %vm527_vm3, %vm530_vm4 }
 0x293   :  { %v532_v44 = vsel %vm531_vm10, 1, %v1393_v1 }
 0x294   :  { %v536_v18 = vpop.permute.xlu1 %535  ;;  %v533_v8 = vadd.s32 %v532_v44, %v522_v45  ;;  %v646_v60 = vpop.permute.xlu0 %645 }
 0x295   :  { %vm539_vm2 = vcmp.eq.f32.partialorder %v536_v18, %v1525_v24  ;;  %vm538_vm8 = vcmp.gt.f32.partialorder %v536_v18, %v1525_v24 }
 0x296   :  { %vm541_vm9 = vmand %vm539_vm2, %vm540_vm1  ;;  %vm573_vm1 = vcmp.gt.s32.totalorder %v1510_v41, 6 }
 0x297   :  { %vm542_vm15 = vmor %vm538_vm8, %vm541_vm9 }
 0x298   :  { %v543_v62 = vsel %vm542_vm15, 1, %v1393_v1 }
 0x299   :  { %v547_v2 = vpop.permute.xlu1 %546  ;;  %v544_v49 = vadd.s32 %v543_v62, %v533_v8 }
 0x29a   :  { %vm550_vm7 = vcmp.eq.f32.partialorder %v547_v2, %v1525_v24  ;;  %vm549_vm13 = vcmp.gt.f32.partialorder %v547_v2, %v1525_v24 }
 0x29b   :  { %vm552_vm14 = vmand %vm550_vm7, %vm551_vm6 }
 0x29c   :  { %vm553_vm0 = vmor %vm549_vm13, %vm552_vm14  ;;  %vm595_vm13 = vcmp.gt.s32.totalorder %v1510_v41, 8 }
 0x29d   :  { %v554_v48 = vsel %vm553_vm0, 1, %v1393_v1 }
 0x29e   :  { %v558_v5 = vpop.permute.xlu1 %557  ;;  %v555_v50 = vadd.s32 %v554_v48, %v544_v49 }
 0x29f   :  { %vm561_vm12 = vcmp.eq.f32.partialorder %v558_v5, %v1525_v24  ;;  %vm560_vm3 = vcmp.gt.f32.partialorder %v558_v5, %v1525_v24 }
 0x2a0   :  { %vm563_vm4 = vmand %vm561_vm12, %vm562_vm11 }
 0x2a1   :  { %vm564_vm8 = vmor %vm560_vm3, %vm563_vm4  ;;  %vm617_vm3 = vcmp.gt.s32.totalorder %v1510_v41, 10  ;;  %vm616_vm4 = vcmp.eq.f32.partialorder %v613_v52, %v1525_v24 }
 0x2a2   :  { %v565_v46 = vsel %vm564_vm8, 1, %v1393_v1 }
 0x2a3   :  { %v569_v12 = vpop.permute.xlu1 %568  ;;  %v566_v47 = vadd.s32 %v565_v46, %v555_v50 }
 0x2a4   :  { %vm572_vm2 = vcmp.eq.f32.partialorder %v569_v12, %v1525_v24  ;;  %vm571_vm6 = vcmp.gt.f32.partialorder %v569_v12, %v1525_v24 }
 0x2a5   :  { %vm574_vm7 = vmand %vm572_vm2, %vm573_vm1 }
 0x2a6   :  { %vm575_vm12 = vmor %vm571_vm6, %vm574_vm7 }
 0x2a7   :  { %v576_v53 = vsel %vm575_vm12, 1, %v1393_v1  ;;  %vm618_vm6 = vmand %vm616_vm4, %vm617_vm3  ;;  %vm628_vm12 = vcmp.gt.s32.totalorder %v1510_v41, 11  ;;  %vm649_vm3 = vcmp.eq.f32.partialorder %v646_v60, %v1525_v24 }
 0x2a8   :  { %v580_v63 = vpop.permute.xlu1 %579  ;;  %v577_v29 = vadd.s32 %v576_v53, %v566_v47 }
 0x2a9   :  { %vm583_vm9 = vcmp.eq.f32.partialorder %v580_v63, %v1525_v24  ;;  %vm582_vm10 = vcmp.gt.f32.partialorder %v580_v63, %v1525_v24 }
 0x2aa   :  { %vm585_vm11 = vmand %vm583_vm9, %vm584_vm5  ;;  %vm606_vm5 = vcmp.gt.s32.totalorder %v1510_v41, 9  ;;  %vm615_vm9 = vcmp.gt.f32.partialorder %v613_v52, %v1525_v24 }
 0x2ab   :  { %vm586_vm14 = vmor %vm582_vm10, %vm585_vm11 }
 0x2ac   :  { %v587_v28 = vsel %vm586_vm14, 1, %v1393_v1 }
 0x2ad   :  { %v591_v51 = vpop.permute.xlu1 %590  ;;  %v588_v57 = vadd.s32 %v587_v28, %v577_v29 }
 0x2ae   :  { %vm593_vm15 = vcmp.gt.f32.partialorder %v591_v51, %v1525_v24  ;;  %vm594_vm1 = vcmp.eq.f32.partialorder %v591_v51, %v1525_v24 }
 0x2af   :  { %vm596_vm2 = vmand %vm594_vm1, %vm595_vm13 }
 0x2b0   :  { %vm597_vm0 = vmor %vm593_vm15, %vm596_vm2  ;;  %vm650_vm2 = vcmp.gt.s32.totalorder %v1510_v41, 13 }
 0x2b1   :  { %v598_v30 = vsel %vm597_vm0, 1, %v1393_v1  ;;  %vm619_vm13 = vmor %vm615_vm9, %vm618_vm6  ;;  %vm639_vm0 = vcmp.gt.s32.totalorder %v1510_v41, 12 }
 0x2b2   :  { %v602_v56 = vpop.permute.xlu1 %601  ;;  %v599_v58 = vadd.s32 %v598_v30, %v588_v57  ;;  %v620_v20 = vsel %vm619_vm13, 1, %v1393_v1 }
 0x2b3   :  { %vm604_vm7 = vcmp.gt.f32.partialorder %v602_v56, %v1525_v24  ;;  %vm605_vm8 = vcmp.eq.f32.partialorder %v602_v56, %v1525_v24 }
 0x2b4   :  { %vm607_vm10 = vmand %vm605_vm8, %vm606_vm5  ;;  %vm648_vm8 = vcmp.gt.f32.partialorder %v646_v60, %v1525_v24 }
 0x2b5   :  { %vm608_vm11 = vmor %vm604_vm7, %vm607_vm10 }
 0x2b6   :  { %v609_v59 = vsel %vm608_vm11, 1, %v1393_v1  ;;  %vm651_vm5 = vmand %vm649_vm3, %vm650_vm2  ;;  %vm661_vm11 = vcmp.gt.s32.totalorder %v1510_v41, 14  ;;  %vm672_vm2 = vcmp.gt.s32.totalorder %v1510_v41, 15 }
 0x2b7   :  { %v610_v61 = vadd.s32 %v609_v59, %v599_v58  ;;  %v624_v19 = vpop.permute.xlu1 %623 }
 0x2b8   :  { %vm626_vm14 = vcmp.gt.f32.partialorder %v624_v19, %v1525_v24  ;;  %vm627_vm15 = vcmp.eq.f32.partialorder %v624_v19, %v1525_v24  ;;  %v916_v19 = vld [vmem:[%s1774_s2 + $0x90] sm:$0xff] }
 0x2b9   :  { %vm629_vm1 = vmand %vm627_vm15, %vm628_vm12  ;;  %v621_v23 = vadd.s32 %v620_v20, %v610_v61  ;;  %v919_v61 = vld [vmem:[%s1774_s2 + $0xa8] sm:$0xff]  ;;  %v918_v20 = vld [vmem:[%s1774_s2 + $0xa0] sm:$0xff] }
 0x2ba   :  { %vm630_vm4 = vmor %vm626_vm14, %vm629_vm1  ;;  %1064 = vmatprep.subr.mxu0 %v919_v61 }
 0x2bb   :  { %v631_v3 = vsel %vm630_vm4, 1, %v1393_v1  ;;  %vm652_vm12 = vmor %vm648_vm8, %vm651_vm5  ;;  %vm679_vm8 = vcmask 123904   ;;  %1065 = vmatpush1.msra.mxu0 %v918_v20  ;;  %v920_v20 = vld [vmem:[%s1774_s2 + $0xb0] sm:$0xff] }
 0x2bc   :  { %v635_v4 = vpop.permute.xlu1 %634  ;;  %v632_v34 = vadd.s32 %v631_v3, %v621_v23  ;;  %v653_v37 = vsel %vm652_vm12, 1, %v1393_v1  ;;  %v911_v23 = vld [vmem:[%s1774_s2 + $0x68] sm:$0xff]  ;;  %v913_v3 = vld [vmem:[%s1774_s2 + $0x78] sm:$0xff] }
 0x2bd   :  { %vm637_vm6 = vcmp.gt.f32.partialorder %v635_v4, %v1525_v24  ;;  %vm638_vm7 = vcmp.eq.f32.partialorder %v635_v4, %v1525_v24  ;;  %1066 = vmatprep.subr.mxu0 %v913_v3  ;;  %v910_v4 = vld [vmem:[%s1774_s2 + $0x60] sm:$0xff] }
 0x2be   :  { %vm640_vm9 = vmand %vm638_vm7, %vm639_vm0  ;;  %vm785_vm7 = vcmp.lt.s32.totalorder %v1609_v6, 10  ;;  %v903_v6 = vld [vmem:[%s1774_s2 + $0x28] sm:$0xff] }
 0x2bf   :  { %vm641_vm10 = vmor %vm637_vm6, %vm640_vm9  ;;  %vm768_vm6 = vcmp.lt.s32.totalorder %v1446_v9, 5 }
 0x2c0   :  { %v642_v35 = vsel %vm641_vm10, 1, %v1393_v1 }
 0x2c1   :  { %v643_v38 = vadd.s32 %v642_v35, %v632_v34  ;;  %v657_v36 = vpop.permute.xlu1 %656  ;;  %v912_v34 = vld [vmem:[%s1774_s2 + $0x70] sm:$0xff]  ;;  %v905_v35 = vld [vmem:[%s1774_s2 + $0x38] sm:$0xff] }
 0x2c2   :  { %vm659_vm13 = vcmp.gt.f32.partialorder %v657_v36, %v1525_v24  ;;  %vm660_vm14 = vcmp.eq.f32.partialorder %v657_v36, %v1525_v24  ;;  %1067 = vmatpush1.msra.mxu0 %v912_v34  ;;  %v904_v36 = vld [vmem:[%s1774_s2 + $0x30] sm:$0xff]  ;;  %v909_v34 = vld [vmem:[%s1774_s2 + $0x58] sm:$0xff] }
 0x2c3   :  { %vm662_vm15 = vmand %vm660_vm14, %vm661_vm11  ;;  %v654_v39 = vadd.s32 %v653_v37, %v643_v38  ;;  %vm782_vm11 = vcmp.ge.s32.totalorder %v1446_v9, 5  ;;  %v907_v38 = vld [vmem:[%s1774_s2 + $0x48] sm:$0xff]  ;;  %v906_v37 = vld [vmem:[%s1774_s2 + $0x40] sm:$0xff] }
 0x2c4   :  { %vm663_vm1 = vmor %vm659_vm13, %vm662_vm15  ;;  %1068 = vmatprep.subr.mxu0 %v907_v38  ;;  %v902_v38 = vld [vmem:[%s1774_s2 + $0x20] sm:$0xff] }
 0x2c5   :  { %v664_v21 = vsel %vm663_vm1, 1, %v1393_v1  ;;  %1069 = vmatpush1.msra.mxu0 %v906_v37  ;;  %v1266_v37 = vld [vmem:[%s1774_s2 + $0xc0] ss:$8 sm:$0x30] }
 0x2c6   :  { %v668_v22 = vpop.permute.xlu1 %667  ;;  %v665_v25 = vadd.s32 %v664_v21, %v654_v39  ;;  %v899_v39 = vld [vmem:[%s1774_s2 + $0x8] sm:$0xff]  ;;  %v901_v21 = vld [vmem:[%s1774_s2 + $0x18] sm:$0xff] }
 0x2c7   :  { %vm670_vm3 = vcmp.gt.f32.partialorder %v668_v22, %v1525_v24  ;;  %vm671_vm4 = vcmp.eq.f32.partialorder %v668_v22, %v1525_v24  ;;  %v898_v22 = vld [vmem:[%s1774_s2] sm:$0xff]  ;;  %1070 = vmatprep.subr.mxu0 %v901_v21 }
 0x2c8   :  { %vm673_vm0 = vmand %vm671_vm4, %vm672_vm2  ;;  %vm814_vm2 = vcmask 130048  }
 0x2c9   :  { %vm674_vm5 = vmor %vm670_vm3, %vm673_vm0 }
 0x2ca   :  { %v675_v7 = vsel %vm674_vm5, 1, %v1393_v1 }
 0x2cb   :  { %v676_v27 = vadd.s32 %v675_v7, %v665_v25  ;;  %v900_v25 = vld [vmem:[%s1774_s2 + $0x10] sm:$0xff]  ;;  %v921_v7 = vld [vmem:[%s1774_s2 + $0xb8] sm:$0xff] }
 0x2cc   :  { %1071 = vmatpush1.msra.mxu0 %v900_v25 }
 0x2cd   :  { %v775_v24 = vrot.slane %v676_v27, %v1461_v14  ;;  %v793_v55 = vrot.slane %v676_v27, %v1449_v10  ;;  %vm693_vm9 = vcmp.eq.s32.totalorder %v676_v27, 1  ;;  %vm677_vm10 = vcmp.eq.s32.totalorder %v676_v27, 0 }
 0x2ce   :  { %v694_v1 = vsel %vm693_vm9, %v1510_v41, 0  ;;  %v678_v13 = vsel %vm677_vm10, %v1510_v41, 0  ;;  %vm708_vm12 = vcmp.eq.s32.totalorder %v676_v27, 2  ;;  %vm723_vm4 = vcmp.eq.s32.totalorder %v676_v27, 3 }
 0x2cf   :  { %vm776_vm13 = vcmp.eq.s32.totalorder %v775_v24, %v1446_v9  ;;  %vm794_vm14 = vcmp.eq.s32.totalorder %v793_v55, %v1261_v33  ;;  %vm795_vm15 = vcmp.eq.s32.totalorder %v793_v55, %v1262_v54  ;;  %v695_v16 = vsel %vm679_vm8, %v694_v1, 0 }
 0x2d0   :  { %vm778_vm1 = vmand %vm768_vm6, %vm776_vm13  ;;  %v697_v40 = vshrl.u32 %v695_v16, 16  ;;  %v680_v17 = vsel %vm679_vm8, %v678_v13, 0  ;;  %v709_v18 = vsel %vm708_vm12, %v1510_v41, 0  ;;  %v696_v43 = vand.u32 65535, %v695_v16 }
 0x2d1   :  { %v780_v0 = vsel %vm778_vm1, 1.0, %v1396_v32  ;;  %vm796_vm3 = vmand %vm782_vm11, %vm794_vm14  ;;  %v682_v2 = vshrl.u32 %v680_v17, 16  ;;  %v710_v5 = vsel %vm679_vm8, %v709_v18, 0  ;;  %v724_v63 = vsel %vm723_vm4, %v1510_v41, 0 }
 0x2d2   :  { %v798_v12 = vsel %vm796_vm3, 1.0, %v780_v0  ;;  %vm797_vm0 = vmand %vm785_vm7, %vm795_vm15  ;;  %v699_v42 = vcvt.s32.f32 %v697_v40  ;;  %v712_v62 = vshrl.u32 %v710_v5, 16  ;;  %v698_v8 = vcvt.s32.f32 %v696_v43 }
 0x2d3   :  { %1297 = vmatprep.mubr.msk.f32.mxu1 %vm814_vm2, %v798_v12  ;;  %v799_v44 = vsel %vm797_vm0, 1.0, %v1396_v32  ;;  %v684_v45 = vcvt.s32.f32 %v682_v2  ;;  %v711_v48 = vand.u32 65535, %v710_v5  ;;  %vm738_vm5 = vcmp.eq.s32.totalorder %v676_v27, 4 }
 0x2d4   :  { %1298 = vmatmul.mubr.msk.f32.vlgmr.msra.gmra.mxu1 %vm814_vm2, %v799_v44  ;;  %702 = vadd.xlane.f32.xlu1 %v699_v42  ;;  %v714_v49 = vcvt.s32.f32 %v712_v62  ;;  %v681_v46 = vand.u32 65535, %v680_v17  ;;  %v725_v52 = vsel %vm679_vm8, %v724_v63, 0  ;;  %v739_v50 = vsel %vm738_vm5, %v1510_v41, 0  ;;  %v917_v41 = vld [vmem:[%s1774_s2 + $0x98] sm:$0xff] }
 0x2d5   :  { %687 = vadd.xlane.f32.xlu0 %v684_v45  ;;  %1027 = vmatprep.mubr.f32.mxu1 %v1396_v32  ;;  %v713_v51 = vcvt.s32.f32 %v711_v48  ;;  %v726_v53 = vand.u32 65535, %v725_v52  ;;  %v727_v28 = vshrl.u32 %v725_v52, 16  ;;  %v740_v29 = vsel %vm679_vm8, %v739_v50, 0 }
 0x2d6   :  { %v683_v47 = vcvt.s32.f32 %v681_v46  ;;  %v742_v57 = vshrl.u32 %v740_v29, 16  ;;  %v741_v59 = vand.u32 65535, %v740_v29  ;;  %987 = vmatprep.subr.mxu1 %v917_v41  ;;  %vm753_vm8 = vcmask 7168  }
 0x2d7   :  { %v728_v30 = vcvt.s32.f32 %v726_v53  ;;  %v729_v56 = vcvt.s32.f32 %v727_v28  ;;  %988 = vmatpush1.msra.mxu1 %v916_v19  ;;  %vm755_vm9 = vcmask 15360   ;;  %vm757_vm10 = vcmask 23552  }
 0x2d8   :  { %700 = vadd.xlane.f32.xlu1 %v698_v8  ;;  %v744_v58 = vcvt.s32.f32 %v742_v57  ;;  %v743_v60 = vcvt.s32.f32 %v741_v59  ;;  %989 = vmatprep.subr.mxu1 %v911_v23  ;;  %vm759_vm12 = vcmask 31744   ;;  %vm761_vm13 = vcmask 33792   ;;  %v915_v23 = vld [vmem:[%s1774_s2 + $0x88] sm:$0xff] }
 0x2d9   :  { %717 = vadd.xlane.f32.xlu0 %v714_v49  ;;  %990 = vmatpush1.msra.mxu1 %v910_v4  ;;  %v803_v57 = vrot.slane %v1520_v31, %v1461_v14  ;;  %vm1778_vm14 = vcmask 261120   ;;  %vm1196_vm2 = vcmask 1041408  }
 0x2da   :  { %991 = vmatprep.subr.mxu1 %v905_v35  ;;  %vm1779_vm15 = vmmov %vm1778_vm14  ;;  %v908_v35 = vld [vmem:[%s1774_s2 + $0x50] sm:$0xff] }
 0x2db   :  { %992 = vmatpush1.msra.mxu1 %v904_v36  ;;  %v804_v59 = vsel %vm768_vm6, %v803_v57, 0.0  ;;  %vm1780_vm6 = vmmov %vm1778_vm14  ;;  %v1265_v36 = vld [vmem:[%s1774_s2 + $0xc0] ss:$8 sm:$0xf] }
 0x2dc   :  { %715 = vadd.xlane.f32.xlu1 %v713_v51  ;;  %993 = vmatprep.subr.mxu1 %v899_v39  ;;  %vm1783_vm1 = vmmov %vm1780_vm6  ;;  %v925_v39 = vor.u32 %v1266_v37, %v1265_v36 }
 0x2dd   :  { %685 = vadd.xlane.f32.xlu0 %v683_v47  ;;  %994 = vmatpush1.msra.mxu1 %v898_v22 }
 0x2de   :  { %1141 = vmatprep.subr.mxu1 %v921_v7  ;;  %v930_v21 = vrot.slane %v925_v39, %v1461_v14 }
 0x2e0   :  { %730 = vadd.xlane.f32.xlu1 %v728_v30 }
 0x2e1   :  { %732 = vadd.xlane.f32.xlu0 %v729_v56 }
 0x2e5   :  { %747 = vadd.xlane.f32.xlu0 %v744_v58  ;;  %v809_v58 = vrot.slane %v1520_v31, %v1449_v10  ;;  %v914_v31 = vld [vmem:[%s1774_s2 + $0x80] sm:$0xff]  ;;  %s1410_s2 = smov [#allocation5]  }
 0x2e6   :  { %s1246_s1 = sshll.u32 %s1410_s2, 4  ;;  %s1247_s1 = int_to_ptr.vmem [resolvable:$true] %s1246_s1 }
 0x2e7   :  { %v810_v41 = vsel %vm782_vm11, %v809_v58, %v804_v59  ;;  %v811_v3 = vsel %vm785_vm7, %v809_v58, 0.0  ;;  %vm1781_vm11 = vmmov %vm1780_vm6  ;;  %s1365_s22 = scalar_lea.vmem %s1247_s1, 32  ;;  %p1370_p6 = scmp.lt.s32.totalorder %s1247_s1, %s1247_s1 }
 0x2e8   :  { %vm1782_vm7 = vmmov %vm1780_vm6  ;;  %p1366_p5 = scmp.ne.s32.totalorder %s1247_s1, %s1365_s22  ;;  %p1371_p7 = scmp.lt.s32.totalorder %s1365_s22, %s1365_s22 }
 0x2e9   :  { %745 = vadd.xlane.f32.xlu0 %v743_v60 }
 0x2ea   :  { %p1372_p8 = por %p1371_p7, %p1370_p6 }
 0x2ec   :  { %p1373_p9 = pnand %p1372_p8, %p1366_p5 }
 0x35d   :  { %v703_v27 = vpop.xlane.xlu1 %702 }
 0x35e   :  { %v688_v33 = vpop.xlane.xlu0 %687  ;;  %v705_v16 = vcvt.f32.s32 %v703_v27  ;;  %v938_v27 = vrot.slane %v925_v39, %v1475_v26 }
 0x35f   :  { %v690_v13 = vcvt.f32.s32 %v688_v33 }
 0x360   :  { %v706_v43 = vshll.u32 %v705_v16, 16 }
 0x361   :  { %v701_v54 = vpop.xlane.xlu1 %700  ;;  %v691_v2 = vshll.u32 %v690_v13, 16  ;;  %v941_v13 = vsub.s32 3, %v1446_v9  ;;  %v946_v9 = vrot.slane %v925_v39, %v1464_v15 }
 0x362   :  { %v718_v24 = vpop.xlane.xlu0 %717  ;;  %v704_v5 = vcvt.f32.s32 %v701_v54 }
 0x363   :  { %v720_v18 = vcvt.f32.s32 %v718_v24  ;;  %v942_v26 = vrot.slane %v925_v39, %v941_v13 }
 0x364   :  { %v707_v48 = vadd.s32 %v706_v43, %v704_v5 }
 0x365   :  { %v716_v1 = vpop.xlane.xlu1 %715  ;;  %v721_v63 = vshll.u32 %v720_v18, 16 }
 0x366   :  { %v686_v55 = vpop.xlane.xlu0 %685  ;;  %v719_v12 = vcvt.f32.s32 %v716_v1  ;;  %v934_v1 = vrot.slane %v925_v39, %v1449_v10 }
 0x367   :  { %v689_v40 = vcvt.f32.s32 %v686_v55 }
 0x368   :  { %v722_v46 = vadd.s32 %v721_v63, %v719_v12  ;;  %v950_v63 = vrot.slane %v925_v39, %v1452_v11 }
 0x369   :  { %v731_v42 = vpop.xlane.xlu1 %730  ;;  %v692_v44 = vadd.s32 %v691_v2, %v689_v40 }
 0x36a   :  { %v733_v17 = vpop.xlane.xlu0 %732  ;;  %v734_v49 = vcvt.f32.s32 %v731_v42 }
 0x36b   :  { %v735_v0 = vcvt.f32.s32 %v733_v17  ;;  %v754_v51 = vsel %vm753_vm8, %v692_v44, %v707_v48 }
 0x36c   :  { %v756_v29 = vsel %vm755_vm9, %v754_v51, %v722_v46 }
 0x36d   :  { %v736_v45 = vshll.u32 %v735_v0, 16 }
 0x36e   :  { %v748_v62 = vpop.xlane.xlu0 %747 }
 0x36f   :  { %v750_v8 = vcvt.f32.s32 %v748_v62  ;;  %v737_v52 = vadd.s32 %v736_v45, %v734_v49 }
 0x371   :  { %v751_v53 = vshll.u32 %v750_v8, 16  ;;  %v758_v30 = vsel %vm757_vm10, %v756_v29, %v737_v52 }
 0x372   :  { %v746_v50 = vpop.xlane.xlu0 %745 }
 0x373   :  { %v749_v47 = vcvt.f32.s32 %v746_v50 }
 0x375   :  { %v752_v28 = vadd.s32 %v751_v53, %v749_v47 }
 0x377   :  { %v760_v56 = vsel %vm759_vm12, %v758_v30, %v752_v28 }
 0x378   :  { %762 = vst.msk [vmem:[#allocation5] sm:$0x3] %vm761_vm13, %v760_v56 }
 0x394   :  { %v1299_v60 = vpop.f32.mrf.mxu1 }
 0x395   :  { %v897_v4 = vadd.f32 %v1299_v60, %v811_v3 }
 0x396   :  { %v887_v61 = vpop.f32.mrf.mxu1 }
 0x397   :  { %v896_v19 = vadd.f32 %v887_v61, %v810_v41 }
 0x399   :  { %1267 = vmatmul.mubr.msk.f32.vlgmr.msra.gmra.mxu1 %vm1778_vm14, %v896_v19  ;;  %1269 = vmatmul.mubr.msk.f32.vlgmr.msra.gmra.mxu0 %vm1779_vm15, %v896_v19 }
 0x39a   :  { %1142 = vmatpush1.msra.mxu1 %v920_v20  ;;  %1033 = vmatprep.mubr.f32.mxu1 %v1396_v32 }
 0x39b   :  { %1143 = vmatprep.subr.mxu1 %v915_v23  ;;  %1110 = vmatprep.mubr.f32.mxu0 %v1396_v32 }
 0x39c   :  { %1144 = vmatpush1.msra.mxu1 %v914_v31 }
 0x39d   :  { %1268 = vmatmul.mubr.msk.f32.gmra.mxu1 %vm1780_vm6, %v897_v4  ;;  %1270 = vmatmul.mubr.msk.f32.gmra.mxu0 %vm1781_vm11, %v897_v4 }
 0x39e   :  { %1145 = vmatprep.subr.mxu1 %v909_v34  ;;  %1181 = vmatprep.mubr.f32.mxu1 %v1396_v32 }
 0x39f   :  { %1146 = vmatpush1.msra.mxu1 %v908_v35 }
 0x3a0   :  { %1147 = vmatprep.subr.mxu1 %v903_v6 }
 0x3a1   :  { %1148 = vmatpush1.msra.mxu1 %v902_v38 }
 0x3a2   :  { %1271 = vmatmul.mubr.msk.f32.vlgmr.msra.gmra.mxu1 %vm1782_vm7, %v896_v19 }
 0x3a3   :  { %1187 = vmatprep.mubr.f32.mxu1 %v1396_v32 }
 0x3a6   :  { %1272 = vmatmul.mubr.msk.f32.gmra.mxu1 %vm1783_vm1, %v897_v4 }
 0x459   :  { %v1029_v22 = vpop.f32.mrf.mxu1  ;;  %v1106_v25 = vpop.f32.mrf.mxu0 }
 0x45a   :  { %v1030_v7 = vadd.f32 %v1029_v22, %v930_v21  ;;  %v1107_v55 = vadd.f32 %v1106_v25, %v938_v27 }
 0x45b   :  { %v1031_v33 = vpop.f32.mrf.mxu1  ;;  %v1108_v32 = vpop.f32.mrf.mxu0 }
 0x45c   :  { %1194 = vmax.index.xlane.f32.xlu1 %v1030_v7  ;;  %v1032_v18 = vadd.f32 %v1031_v33, %v934_v1  ;;  %v1109_v10 = vadd.f32 %v1108_v32, %v942_v26 }
 0x45d   :  { %v1035_v54 = vpop.f32.mrf.mxu1  ;;  %v1112_v24 = vpop.f32.mrf.mxu0 }
 0x45e   :  { %v1036_v16 = vadd.f32 %v1035_v54, %v930_v21  ;;  %v1113_v17 = vadd.f32 %v1112_v24, %v938_v27 }
 0x45f   :  { %v1037_v40 = vpop.f32.mrf.mxu1  ;;  %v1114_v12 = vpop.f32.mrf.mxu0 }
 0x460   :  { %1205 = vmax.index.xlane.f32.xlu1 %v1107_v55  ;;  %v1197_v14 = vsel %vm1196_vm2, %v1036_v16, -inf  ;;  %v1038_v2 = vadd.f32 %v1037_v40, %v934_v1  ;;  %v1207_v5 = vsel %vm1196_vm2, %v1113_v17, -inf  ;;  %v1115_v43 = vadd.f32 %v1114_v12, %v942_v26 }
 0x461   :  { %1198 = vmax.index.xlane.f32.xlu0 %v1197_v14 }
 0x462   :  { %v1183_v0 = vpop.f32.mrf.mxu1  ;;  %v1202_v44 = vsel %vm1196_vm2, %v1038_v2, -inf  ;;  %v1212_v48 = vsel %vm1196_vm2, %v1115_v43, -inf }
 0x463   :  { %v1184_v62 = vadd.f32 %v1183_v0, %v946_v9 }
 0x464   :  { %1200 = vmax.index.xlane.f32.xlu1 %v1032_v18  ;;  %v1185_v42 = vpop.f32.mrf.mxu1 }
 0x465   :  { %1208 = vmax.index.xlane.f32.xlu0 %v1207_v5  ;;  %v1186_v46 = vadd.f32 %v1185_v42, %v950_v63 }
 0x466   :  { %v1189_v45 = vpop.f32.mrf.mxu1 }
 0x467   :  { %v1190_v8 = vadd.f32 %v1189_v45, %v946_v9 }
 0x468   :  { %1210 = vmax.index.xlane.f32.xlu1 %v1109_v10  ;;  %v1191_v49 = vpop.f32.mrf.mxu1 }
 0x469   :  { %1203 = vmax.index.xlane.f32.xlu0 %v1202_v44  ;;  %v1192_v52 = vadd.f32 %v1191_v49, %v950_v63  ;;  %v1217_v15 = vsel %vm1196_vm2, %v1190_v8, -inf }
 0x46b   :  { %v1222_v50 = vsel %vm1196_vm2, %v1192_v52, -inf }
 0x46c   :  { %1215 = vmax.index.xlane.f32.xlu1 %v1184_v62 }
 0x46d   :  { %1213 = vmax.index.xlane.f32.xlu0 %v1212_v48 }
 0x470   :  { %1220 = vmax.index.xlane.f32.xlu1 %v1186_v46 }
 0x471   :  { %1218 = vmax.index.xlane.f32.xlu0 %v1217_v15 }
 0x475   :  { %1223 = vmax.index.xlane.f32.xlu0 %v1222_v50 }
 0x476   :  { %1376 = shalt.err (!%p1373_p9)
}
 0x477   :  { %1249 = dma.vmem_to_hbm [thread:$0]  %s1247_s1, 32, %s1775_s3, [#allocation4]   ;;  %vm1233_vm3 = vcmask 39936   ;;  %vm1236_vm4 = vcmask 48128   ;;  %vm1238_vm0 = vcmask 41984  }
 0x4e5   :  { %v1195_v11 = vpop.xlane.xlu1 %1194 }
 0x4e9   :  { %v1206_v51 = vpop.xlane.xlu1 %1205 }
 0x4ea   :  { %v1199_v53 = vpop.xlane.xlu0 %1198 }
 0x4ed   :  { %v1201_v47 = vpop.xlane.xlu1 %1200 }
 0x4ee   :  { %v1209_v28 = vpop.xlane.xlu0 %1208  ;;  %v1225_v56 = vsel %vm753_vm8, %v1195_v11, %v1201_v47 }
 0x4ef   :  { %v1227_v59 = vsel %vm755_vm9, %v1225_v56, %v1206_v51 }
 0x4f1   :  { %v1211_v29 = vpop.xlane.xlu1 %1210 }
 0x4f2   :  { %v1204_v30 = vpop.xlane.xlu0 %1203  ;;  %v1229_v60 = vsel %vm757_vm10, %v1227_v59, %v1211_v29 }
 0x4f3   :  { %v1226_v41 = vsel %vm753_vm8, %v1199_v53, %v1204_v30 }
 0x4f4   :  { %v1228_v31 = vsel %vm755_vm9, %v1226_v41, %v1209_v28 }
 0x4f5   :  { %v1216_v57 = vpop.xlane.xlu1 %1215 }
 0x4f6   :  { %v1214_v58 = vpop.xlane.xlu0 %1213  ;;  %v1231_v61 = vsel %vm759_vm12, %v1229_v60, %v1216_v57 }
 0x4f7   :  { %v1230_v3 = vsel %vm757_vm10, %v1228_v31, %v1214_v58 }
 0x4f9   :  { %v1221_v19 = vpop.xlane.xlu1 %1220 }
 0x4fa   :  { %v1234_v20 = vsel %vm1233_vm3, %v1231_v61, %v1221_v19  ;;  %v1219_v23 = vpop.xlane.xlu0 %1218 }
 0x4fb   :  { %1237 = vst.msk [vmem:[%s1776_s4] sm:$0xff] %vm1236_vm4, %v1234_v20  ;;  %v1232_v4 = vsel %vm759_vm12, %v1230_v3, %v1219_v23 }
 0x4fe   :  { %v1224_v34 = vpop.xlane.xlu0 %1223 }
 0x4ff   :  { %v1235_v35 = vsel %vm1233_vm3, %v1232_v4, %v1224_v34 }
 0x500   :  { %1239 = vst.msk [vmem:[%s1776_s4 + $0x8] sm:$0x3] %vm1238_vm0, %v1235_v35 }
 0x501   :  { %1387 = dma.done.wait [#allocation4], 32  }
 0x502   :  { %1388 = vsyncadd [#allocation4], 4294967264 }
 0x503   :  { %1257 = vsyncpa [#allocation3], 1 }
 0x504   :  { %1258 = vsyncpa [#allocation4], 1 }

</bundles_post_ra>
